<compile_context>
chip_gen: v5e
topology: v5e:2x2
jax: 0.10.0
libtpu: 0.0.40
codegen_flags: <defaults>
</compile_context>

<pallas_src>
import functools
import math

import jax
import jax.numpy as jnp
from jax.experimental import pallas as pl
from jax.experimental.pallas import tpu as pltpu

_LANE = 128  # lane width: feature dims and the adjacency src axis pad to this


def _round_up(x, m):
    return -(-x // m) * m


def _pad2(x, rows, cols):
    return jnp.pad(x, ((0, rows - x.shape[0]), (0, cols - x.shape[1])))


def _gcn_layer_kernel(adj_ref, nsrc_ref, h_ref, ndst_ref, w_ref, b_ref,
                      out_ref, acc_ref, *, apply_relu):
    """One (dst_block, src_block) grid step of a GCN layer.

    adj_ref : [blk_dst, blk_src] bf16  raw 0/1 adjacency tile (A[dst, src])
    nsrc_ref: [blk_src, 1]       f32   norm for the src rows
    h_ref   : [blk_src, F_in_p]  f32   input features for the src rows
    ndst_ref: [blk_dst, 1]       f32   norm for the dst rows
    w_ref   : [F_in_p, F_out_p]  bf16
    b_ref   : [1, F_out_p]       f32
    acc_ref : [blk_dst, F_in_p]  f32   scratch accumulator (aggregate-first)
    """
    s = pl.program_id(1)

    @pl.when(s == 0)
    def _():
        acc_ref[...] = jnp.zeros_like(acc_ref)

    # msg = norm_src * H in f32 (VPU, free under the MXU), cast to bf16 for
    # the MXU; adjacency is exact 0/1 in bf16; accumulate in f32.
    msg = (h_ref[...] * nsrc_ref[...]).astype(jnp.bfloat16)
    acc_ref[...] += jnp.dot(adj_ref[...], msg,
                            preferred_element_type=jnp.float32)

    @pl.when(s == pl.num_programs(1) - 1)
    def _():
        agg = acc_ref[...] * ndst_ref[...]                     # f32 norm_dst scale
        out = jnp.dot(agg.astype(jnp.bfloat16), w_ref[...],
                      preferred_element_type=jnp.float32) + b_ref[...]
        if apply_relu:
            out = jnp.maximum(out, 0.0)
        out_ref[...] = out.astype(out_ref.dtype)


def _gcn_layer(adj_b, norm_p, h, w_b, b, *, apply_relu, blk_dst, blk_src):
    n_p = adj_b.shape[0]
    f_in_p = h.shape[1]
    f_out_p = w_b.shape[1]
    grid = (n_p // blk_dst, n_p // blk_src)

    flops = 2 * n_p * n_p * f_in_p + 2 * n_p * f_in_p * f_out_p
    bytes_accessed = (adj_b.size * 2 + h.size * 4 + n_p * f_out_p * 4
                      + w_b.size * 2 + b.size * 4 + 2 * norm_p.size * 4)

    return pl.pallas_call(
        functools.partial(_gcn_layer_kernel, apply_relu=apply_relu),
        out_shape=jax.ShapeDtypeStruct((n_p, f_out_p), jnp.float32),
        grid_spec=pltpu.PrefetchScalarGridSpec(
            num_scalar_prefetch=0,
            grid=grid,
            in_specs=[
                pl.BlockSpec((blk_dst, blk_src), lambda d, s: (d, s)),   # adj
                pl.BlockSpec((blk_src, 1),       lambda d, s: (s, 0)),   # norm_src
                pl.BlockSpec((blk_src, f_in_p),  lambda d, s: (s, 0)),   # H
                pl.BlockSpec((blk_dst, 1),       lambda d, s: (d, 0)),   # norm_dst
                pl.BlockSpec((f_in_p, f_out_p),  lambda d, s: (0, 0)),   # W
                pl.BlockSpec((1, f_out_p),       lambda d, s: (0, 0)),   # bias
            ],
            out_specs=pl.BlockSpec((blk_dst, f_out_p), lambda d, s: (d, 0)),
            scratch_shapes=[pltpu.VMEM((blk_dst, f_in_p), jnp.float32)],
        ),
        compiler_params=pltpu.CompilerParams(
            # dst blocks independent -> shard across TCs on v7x; src is the
            # reduction axis (accumulator carried in scratch) -> arbitrary.
            dimension_semantics=("parallel", "arbitrary"),
            vmem_limit_bytes=64 * 1024 * 1024,
        ),
        cost_estimate=pl.CostEstimate(
            flops=flops, transcendentals=0, bytes_accessed=bytes_accessed),
    )(adj_b, norm_p, h, norm_p, w_b, b)


def gcn_forward(features, params, adj, norm, *, blk_dst=128, blk_src=128):
    """3-layer GCN: relu, relu, linear.  Returns (h_final, hidden_of_layer2)."""
    (w1, b1), (w2, b2), (w3, b3) = params
    n, f_in = features.shape
    f_hid = w1.shape[1]
    f_out = w3.shape[1]

    n_p = _round_up(n, math.lcm(blk_dst, blk_src))
    f0p = _round_up(f_in, _LANE)
    f1p = _round_up(f_hid, _LANE)
    f2p = _round_up(f_out, _LANE)

    # Raw 0/1 adjacency in bf16 (exact); norm kept in f32 and applied in-kernel.
    adj_b = _pad2(adj, n_p, n_p).astype(jnp.bfloat16)
    norm_p = _pad2(norm, n_p, 1)          # padded rows -> norm 0 -> msg 0
    h_p = _pad2(features, n_p, f0p)
    w1b, b1p = _pad2(w1, f0p, f1p).astype(jnp.bfloat16), _pad2(b1, 1, f1p)
    w2b, b2p = _pad2(w2, f1p, f1p).astype(jnp.bfloat16), _pad2(b2, 1, f1p)
    w3b, b3p = _pad2(w3, f1p, f2p).astype(jnp.bfloat16), _pad2(b3, 1, f2p)

    # Padded dst rows end up as relu(bias) but never contaminate valid rows
    # (padded norm/adj entries are zero) and are sliced off below.
    h1 = _gcn_layer(adj_b, norm_p, h_p, w1b, b1p, apply_relu=True,
                    blk_dst=blk_dst, blk_src=blk_src)
    h2 = _gcn_layer(adj_b, norm_p, h1, w2b, b2p, apply_relu=True,
                    blk_dst=blk_dst, blk_src=blk_src)
    h3 = _gcn_layer(adj_b, norm_p, h2, w3b, b3p, apply_relu=False,
                    blk_dst=blk_dst, blk_src=blk_src)

    return h3[:n, :f_out], h2[:n, :f_hid]


def _init_layer(key, in_feats, out_feats):
    # Matches GCNLayer/NodeApplyModule reset_parameters: U(-stdv, stdv), stdv=1/sqrt(out)
    stdv = 1.0 / math.sqrt(out_feats)
    kw, kb = jax.random.split(key)
    w = jax.random.uniform(kw, (in_feats, out_feats), jnp.float32, -stdv, stdv)
    b = jax.random.uniform(kb, (1, out_feats), jnp.float32, -stdv, stdv)
    return w, b


if __name__ == "__main__":
    key = jax.random.PRNGKey(0)
    N = 300          # non-multiple of 128 -> exercises padding; grid is (3, 3)
    in_feats = 8
    n_hidden = 32
    n_classes = 4

    k_feat, k_adj, k1, k2, k3 = jax.random.split(key, 5)

    features = jax.random.normal(k_feat, (N, in_feats), jnp.float32)

    # Deterministic random graph with self loops, A[dst, src] = 1 per edge.
    adj = (jax.random.uniform(k_adj, (N, N)) < 0.05).astype(jnp.float32)
    adj = jnp.maximum(adj, jnp.eye(N, dtype=jnp.float32))

    # DGL-style norm: in-degree^{-1/2}
    deg = jnp.sum(adj, axis=1, keepdims=True)
    norm = 1.0 / jnp.sqrt(jnp.maximum(deg, 1.0))

    params = [
        _init_layer(k1, in_feats, n_hidden),
        _init_layer(k2, n_hidden, n_hidden),
        _init_layer(k3, n_hidden, n_classes),
    ]

    h_out, hid_out = jax.jit(gcn_forward)(features, params, adj, norm)
    jax.block_until_ready((h_out, hid_out))

    assert h_out.shape == (N, n_classes)
    assert hid_out.shape == (N, n_hidden)

    # Pure-JAX f32 reference following the original per-layer DGL semantics.
    # Kernel uses bf16 MXU inputs with f32 accumulation -> loose tolerance.
    hp = jax.lax.Precision.HIGHEST

    def ref_layer(h, w, b, act):
        xw = jnp.dot(h, w, precision=hp)
        agg = jnp.dot(adj, norm * xw, precision=hp)
        out = norm * agg + b
        return jnp.maximum(out, 0.0) if act else out

    r1 = ref_layer(features, *params[0], True)
    r2 = ref_layer(r1, *params[1], True)
    r3 = ref_layer(r2, *params[2], False)
    assert jnp.allclose(hid_out, r2, rtol=2e-2, atol=1e-2)
    assert jnp.allclose(h_out, r3, rtol=2e-2, atol=1e-2)

    print("KERNEL_OK")
</pallas_src>

<mosaic_0001>
module attributes {stable_mosaic.version = 11 : i64} {
  func.func @_gcn_layer_kernel(%arg0: i32, %arg1: i32, %arg2: memref<128x128xbf16, #tpu.memory_space<vmem>>, %arg3: memref<128x1xf32, #tpu.memory_space<vmem>>, %arg4: memref<128x128xf32, #tpu.memory_space<vmem>>, %arg5: memref<128x1xf32, #tpu.memory_space<vmem>>, %arg6: memref<128x128xbf16, #tpu.memory_space<vmem>>, %arg7: memref<1x128xf32, #tpu.memory_space<vmem>>, %arg8: memref<128x128xf32, #tpu.memory_space<vmem>>, %arg9: memref<128x128xf32, #tpu.memory_space<vmem>>) attributes {dimension_semantics = [#tpu.dimension_semantics<parallel>, #tpu.dimension_semantics<arbitrary>], iteration_bounds = array<i64: 3, 3>, scalar_prefetch = 0 : i64, scratch_operands = 1 : i64, tpu.core_type = #tpu.core_type<tc>, window_params = [{transform_indices = @transform_0, window_bounds = array<i64: 128, 128>}, {transform_indices = @transform_1, window_bounds = array<i64: 128, 1>}, {transform_indices = @transform_2, window_bounds = array<i64: 128, 128>}, {transform_indices = @transform_3, window_bounds = array<i64: 128, 1>}, {pipeline_mode = #tpu.pipeline_mode<synchronous>, transform_indices = @transform_4, window_bounds = array<i64: 128, 128>}, {pipeline_mode = #tpu.pipeline_mode<synchronous>, transform_indices = @transform_5, window_bounds = array<i64: 1, 128>}, {transform_indices = @transform_6, window_bounds = array<i64: 128, 128>}]} {
    %c0_i32 = arith.constant 0 : i32
    %0 = arith.cmpi eq, %arg1, %c0_i32 : i32
    %1 = arith.extui %0 : i1 to i32
    %c0_i32_0 = arith.constant 0 : i32
    %2 = arith.cmpi ne, %1, %c0_i32_0 : i32
    scf.if %2 {
      %cst_11 = arith.constant 0.000000e+00 : f32
      %16 = vector.broadcast %cst_11 : f32 to vector<128x128xf32>
      %c0_12 = arith.constant 0 : index
      %c0_13 = arith.constant 0 : index
      %17 = vector.load %arg9[%c0_12, %c0_13] : memref<128x128xf32, #tpu.memory_space<vmem>>, vector<128x128xf32>
      tpu.vector_store %arg9[%c0_12, %c0_13], %16 {strides = array<i32>} : memref<128x128xf32, #tpu.memory_space<vmem>>, vector<128x128xf32>,
    } else {
    }
    %c0 = arith.constant 0 : index
    %c0_1 = arith.constant 0 : index
    %3 = vector.load %arg4[%c0, %c0_1] : memref<128x128xf32, #tpu.memory_space<vmem>>, vector<128x128xf32>
    %c0_2 = arith.constant 0 : index
    %c0_3 = arith.constant 0 : index
    %4 = vector.load %arg3[%c0_2, %c0_3] : memref<128x1xf32, #tpu.memory_space<vmem>>, vector<128x1xf32>
    %5 = vector.broadcast %4 : vector<128x1xf32> to vector<128x128xf32>
    %6 = arith.mulf %3, %5 : vector<128x128xf32>
    %7 = arith.truncf %6 : vector<128x128xf32> to vector<128x128xbf16>
    %c0_4 = arith.constant 0 : index
    %c0_5 = arith.constant 0 : index
    %8 = vector.load %arg9[%c0_4, %c0_5] : memref<128x128xf32, #tpu.memory_space<vmem>>, vector<128x128xf32>
    %c0_6 = arith.constant 0 : index
    %c0_7 = arith.constant 0 : index
    %9 = vector.load %arg2[%c0_6, %c0_7] : memref<128x128xbf16, #tpu.memory_space<vmem>>, vector<128x128xbf16>
    %cst = arith.constant dense<0.000000e+00> : vector<128x128xf32>
    %10 = tpu.matmul %9, %7, %cst {dimension_numbers = #tpu.dot_dimension_numbers<[1], [0], [0], [1], [0, 0, 1, 1], [], []>} : vector<128x128xbf16>, vector<128x128xbf16>, vector<128x128xf32> -> vector<128x128xf32>
    %11 = arith.addf %8, %10 : vector<128x128xf32>
    %c0_8 = arith.constant 0 : index
    %c0_9 = arith.constant 0 : index
    %12 = vector.load %arg9[%c0_8, %c0_9] : memref<128x128xf32, #tpu.memory_space<vmem>>, vector<128x128xf32>
    tpu.vector_store %arg9[%c0_8, %c0_9], %11 {strides = array<i32>} : memref<128x128xf32, #tpu.memory_space<vmem>>, vector<128x128xf32>,
    %c2_i32 = arith.constant 2 : i32
    %13 = arith.cmpi eq, %arg1, %c2_i32 : i32
    %14 = arith.extui %13 : i1 to i32
    %c0_i32_10 = arith.constant 0 : i32
    %15 = arith.cmpi ne, %14, %c0_i32_10 : i32
    scf.if %15 {
      %c0_11 = arith.constant 0 : index
      %c0_12 = arith.constant 0 : index
      %16 = vector.load %arg9[%c0_11, %c0_12] : memref<128x128xf32, #tpu.memory_space<vmem>>, vector<128x128xf32>
      %c0_13 = arith.constant 0 : index
      %c0_14 = arith.constant 0 : index
      %17 = vector.load %arg5[%c0_13, %c0_14] : memref<128x1xf32, #tpu.memory_space<vmem>>, vector<128x1xf32>
      %18 = vector.broadcast %17 : vector<128x1xf32> to vector<128x128xf32>
      %19 = arith.mulf %16, %18 : vector<128x128xf32>
      %20 = arith.truncf %19 : vector<128x128xf32> to vector<128x128xbf16>
      %c0_15 = arith.constant 0 : index
      %c0_16 = arith.constant 0 : index
      %21 = vector.load %arg6[%c0_15, %c0_16] : memref<128x128xbf16, #tpu.memory_space<vmem>>, vector<128x128xbf16>
      %cst_17 = arith.constant dense<0.000000e+00> : vector<128x128xf32>
      %22 = tpu.matmul %20, %21, %cst_17 {dimension_numbers = #tpu.dot_dimension_numbers<[1], [0], [0], [1], [0, 0, 1, 1], [], []>} : vector<128x128xbf16>, vector<128x128xbf16>, vector<128x128xf32> -> vector<128x128xf32>
      %c0_18 = arith.constant 0 : index
      %c0_19 = arith.constant 0 : index
      %23 = vector.load %arg7[%c0_18, %c0_19] : memref<1x128xf32, #tpu.memory_space<vmem>>, vector<1x128xf32>
      %24 = vector.broadcast %23 : vector<1x128xf32> to vector<128x128xf32>
      %25 = arith.addf %22, %24 : vector<128x128xf32>
      %c0_20 = arith.constant 0 : index
      %c0_21 = arith.constant 0 : index
      %26 = vector.load %arg8[%c0_20, %c0_21] : memref<128x128xf32, #tpu.memory_space<vmem>>, vector<128x128xf32>
      tpu.vector_store %arg8[%c0_20, %c0_21], %25 {strides = array<i32>} : memref<128x128xf32, #tpu.memory_space<vmem>>, vector<128x128xf32>,
    } else {
    }
    return
  }
  func.func @transform_0(%arg0: i32, %arg1: i32) -> (i32, i32) {
    %c0_i32 = arith.constant 0 : i32
    return %arg0, %arg1 : i32, i32
  }
  func.func @transform_1(%arg0: i32, %arg1: i32) -> (i32, i32) {
    %c0_i32 = arith.constant 0 : i32
    %c0_i32_0 = arith.constant 0 : i32
    return %arg1, %c0_i32 : i32, i32
  }
  func.func @transform_2(%arg0: i32, %arg1: i32) -> (i32, i32) {
    %c0_i32 = arith.constant 0 : i32
    %c0_i32_0 = arith.constant 0 : i32
    return %arg1, %c0_i32 : i32, i32
  }
  func.func @transform_3(%arg0: i32, %arg1: i32) -> (i32, i32) {
    %c0_i32 = arith.constant 0 : i32
    %c0_i32_0 = arith.constant 0 : i32
    return %arg0, %c0_i32 : i32, i32
  }
  func.func @transform_4(%arg0: i32, %arg1: i32) -> (i32, i32) {
    %c0_i32 = arith.constant 0 : i32
    %c0_i32_0 = arith.constant 0 : i32
    %c0_i32_1 = arith.constant 0 : i32
    return %c0_i32, %c0_i32_0 : i32, i32
  }
  func.func @transform_5(%arg0: i32, %arg1: i32) -> (i32, i32) {
    %c0_i32 = arith.constant 0 : i32
    %c0_i32_0 = arith.constant 0 : i32
    %c0_i32_1 = arith.constant 0 : i32
    return %c0_i32, %c0_i32_0 : i32, i32
  }
  func.func @transform_6(%arg0: i32, %arg1: i32) -> (i32, i32) {
    %c0_i32 = arith.constant 0 : i32
    %c0_i32_0 = arith.constant 0 : i32
    return %arg0, %c0_i32 : i32, i32
  }
}

module attributes {stable_mosaic.version = 11 : i64} {
  func.func @_gcn_layer_kernel(%arg0: i32, %arg1: i32, %arg2: memref<128x128xbf16, #tpu.memory_space<vmem>>, %arg3: memref<128x1xf32, #tpu.memory_space<vmem>>, %arg4: memref<128x128xf32, #tpu.memory_space<vmem>>, %arg5: memref<128x1xf32, #tpu.memory_space<vmem>>, %arg6: memref<128x128xbf16, #tpu.memory_space<vmem>>, %arg7: memref<1x128xf32, #tpu.memory_space<vmem>>, %arg8: memref<128x128xf32, #tpu.memory_space<vmem>>, %arg9: memref<128x128xf32, #tpu.memory_space<vmem>>) attributes {dimension_semantics = [#tpu.dimension_semantics<parallel>, #tpu.dimension_semantics<arbitrary>], iteration_bounds = array<i64: 3, 3>, scalar_prefetch = 0 : i64, scratch_operands = 1 : i64, tpu.core_type = #tpu.core_type<tc>, window_params = [{transform_indices = @transform_0, window_bounds = array<i64: 128, 128>}, {transform_indices = @transform_1, window_bounds = array<i64: 128, 1>}, {transform_indices = @transform_2, window_bounds = array<i64: 128, 128>}, {transform_indices = @transform_3, window_bounds = array<i64: 128, 1>}, {pipeline_mode = #tpu.pipeline_mode<synchronous>, transform_indices = @transform_4, window_bounds = array<i64: 128, 128>}, {pipeline_mode = #tpu.pipeline_mode<synchronous>, transform_indices = @transform_5, window_bounds = array<i64: 1, 128>}, {transform_indices = @transform_6, window_bounds = array<i64: 128, 128>}]} {
    %c0_i32 = arith.constant 0 : i32
    %0 = arith.cmpi eq, %arg1, %c0_i32 : i32
    %1 = arith.extui %0 : i1 to i32
    %c0_i32_0 = arith.constant 0 : i32
    %2 = arith.cmpi ne, %1, %c0_i32_0 : i32
    scf.if %2 {
      %cst_11 = arith.constant 0.000000e+00 : f32
      %16 = vector.broadcast %cst_11 : f32 to vector<128x128xf32>
      %c0_12 = arith.constant 0 : index
      %c0_13 = arith.constant 0 : index
      %17 = vector.load %arg9[%c0_12, %c0_13] : memref<128x128xf32, #tpu.memory_space<vmem>>, vector<128x128xf32>
      tpu.vector_store %arg9[%c0_12, %c0_13], %16 {strides = array<i32>} : memref<128x128xf32, #tpu.memory_space<vmem>>, vector<128x128xf32>,
    } else {
    }
    %c0 = arith.constant 0 : index
    %c0_1 = arith.constant 0 : index
    %3 = vector.load %arg4[%c0, %c0_1] : memref<128x128xf32, #tpu.memory_space<vmem>>, vector<128x128xf32>
    %c0_2 = arith.constant 0 : index
    %c0_3 = arith.constant 0 : index
    %4 = vector.load %arg3[%c0_2, %c0_3] : memref<128x1xf32, #tpu.memory_space<vmem>>, vector<128x1xf32>
    %5 = vector.broadcast %4 : vector<128x1xf32> to vector<128x128xf32>
    %6 = arith.mulf %3, %5 : vector<128x128xf32>
    %7 = arith.truncf %6 : vector<128x128xf32> to vector<128x128xbf16>
    %c0_4 = arith.constant 0 : index
    %c0_5 = arith.constant 0 : index
    %8 = vector.load %arg9[%c0_4, %c0_5] : memref<128x128xf32, #tpu.memory_space<vmem>>, vector<128x128xf32>
    %c0_6 = arith.constant 0 : index
    %c0_7 = arith.constant 0 : index
    %9 = vector.load %arg2[%c0_6, %c0_7] : memref<128x128xbf16, #tpu.memory_space<vmem>>, vector<128x128xbf16>
    %cst = arith.constant dense<0.000000e+00> : vector<128x128xf32>
    %10 = tpu.matmul %9, %7, %cst {dimension_numbers = #tpu.dot_dimension_numbers<[1], [0], [0], [1], [0, 0, 1, 1], [], []>} : vector<128x128xbf16>, vector<128x128xbf16>, vector<128x128xf32> -> vector<128x128xf32>
    %11 = arith.addf %8, %10 : vector<128x128xf32>
    %c0_8 = arith.constant 0 : index
    %c0_9 = arith.constant 0 : index
    %12 = vector.load %arg9[%c0_8, %c0_9] : memref<128x128xf32, #tpu.memory_space<vmem>>, vector<128x128xf32>
    tpu.vector_store %arg9[%c0_8, %c0_9], %11 {strides = array<i32>} : memref<128x128xf32, #tpu.memory_space<vmem>>, vector<128x128xf32>,
    %c2_i32 = arith.constant 2 : i32
    %13 = arith.cmpi eq, %arg1, %c2_i32 : i32
    %14 = arith.extui %13 : i1 to i32
    %c0_i32_10 = arith.constant 0 : i32
    %15 = arith.cmpi ne, %14, %c0_i32_10 : i32
    scf.if %15 {
      %c0_11 = arith.constant 0 : index
      %c0_12 = arith.constant 0 : index
      %16 = vector.load %arg9[%c0_11, %c0_12] : memref<128x128xf32, #tpu.memory_space<vmem>>, vector<128x128xf32>
      %c0_13 = arith.constant 0 : index
      %c0_14 = arith.constant 0 : index
      %17 = vector.load %arg5[%c0_13, %c0_14] : memref<128x1xf32, #tpu.memory_space<vmem>>, vector<128x1xf32>
      %18 = vector.broadcast %17 : vector<128x1xf32> to vector<128x128xf32>
      %19 = arith.mulf %16, %18 : vector<128x128xf32>
      %20 = arith.truncf %19 : vector<128x128xf32> to vector<128x128xbf16>
      %c0_15 = arith.constant 0 : index
      %c0_16 = arith.constant 0 : index
      %21 = vector.load %arg6[%c0_15, %c0_16] : memref<128x128xbf16, #tpu.memory_space<vmem>>, vector<128x128xbf16>
      %cst_17 = arith.constant dense<0.000000e+00> : vector<128x128xf32>
      %22 = tpu.matmul %20, %21, %cst_17 {dimension_numbers = #tpu.dot_dimension_numbers<[1], [0], [0], [1], [0, 0, 1, 1], [], []>} : vector<128x128xbf16>, vector<128x128xbf16>, vector<128x128xf32> -> vector<128x128xf32>
      %c0_18 = arith.constant 0 : index
      %c0_19 = arith.constant 0 : index
      %23 = vector.load %arg7[%c0_18, %c0_19] : memref<1x128xf32, #tpu.memory_space<vmem>>, vector<1x128xf32>
      %24 = vector.broadcast %23 : vector<1x128xf32> to vector<128x128xf32>
      %25 = arith.addf %22, %24 : vector<128x128xf32>
      %cst_20 = arith.constant 0.000000e+00 : f32
      %26 = vector.broadcast %cst_20 : f32 to vector<128x128xf32>
      %27 = arith.maximumf %25, %26 : vector<128x128xf32>
      %c0_21 = arith.constant 0 : index
      %c0_22 = arith.constant 0 : index
      %28 = vector.load %arg8[%c0_21, %c0_22] : memref<128x128xf32, #tpu.memory_space<vmem>>, vector<128x128xf32>
      tpu.vector_store %arg8[%c0_21, %c0_22], %27 {strides = array<i32>} : memref<128x128xf32, #tpu.memory_space<vmem>>, vector<128x128xf32>,
    } else {
    }
    return
  }
  func.func @transform_0(%arg0: i32, %arg1: i32) -> (i32, i32) {
    %c0_i32 = arith.constant 0 : i32
    return %arg0, %arg1 : i32, i32
  }
  func.func @transform_1(%arg0: i32, %arg1: i32) -> (i32, i32) {
    %c0_i32 = arith.constant 0 : i32
    %c0_i32_0 = arith.constant 0 : i32
    return %arg1, %c0_i32 : i32, i32
  }
  func.func @transform_2(%arg0: i32, %arg1: i32) -> (i32, i32) {
    %c0_i32 = arith.constant 0 : i32
    %c0_i32_0 = arith.constant 0 : i32
    return %arg1, %c0_i32 : i32, i32
  }
  func.func @transform_3(%arg0: i32, %arg1: i32) -> (i32, i32) {
    %c0_i32 = arith.constant 0 : i32
    %c0_i32_0 = arith.constant 0 : i32
    return %arg0, %c0_i32 : i32, i32
  }
  func.func @transform_4(%arg0: i32, %arg1: i32) -> (i32, i32) {
    %c0_i32 = arith.constant 0 : i32
    %c0_i32_0 = arith.constant 0 : i32
    %c0_i32_1 = arith.constant 0 : i32
    return %c0_i32, %c0_i32_0 : i32, i32
  }
  func.func @transform_5(%arg0: i32, %arg1: i32) -> (i32, i32) {
    %c0_i32 = arith.constant 0 : i32
    %c0_i32_0 = arith.constant 0 : i32
    %c0_i32_1 = arith.constant 0 : i32
    return %c0_i32, %c0_i32_0 : i32, i32
  }
  func.func @transform_6(%arg0: i32, %arg1: i32) -> (i32, i32) {
    %c0_i32 = arith.constant 0 : i32
    %c0_i32_0 = arith.constant 0 : i32
    return %arg0, %c0_i32 : i32, i32
  }
}

</mosaic_0001>

<bundles_post_ra>
// kernel: gcn_forward.5
= control target key start
LH: loop header
LB: loop body
LE: loop exit
PB: predicated region body
PF: predicated region fallthrough
CT: control target
= control target key end

     0   :  { %s1453_s21 = smov 0   ;;  %s1455_s22 = smov 0   ;;  %s1680_s0 = inlined_call_operand.vmem [shape: bf16[384,384], index: 0, kind: input, shape index: {}]   ;;  %s1681_s1 = inlined_call_operand.vmem [shape: f32[384,1], index: 1, kind: input, shape index: {}, may-alias: {1,3}]   ;;  %s1682_s2 = inlined_call_operand.vmem [shape: f32[384,128], index: 2, kind: input, shape index: {}]   ;;  %s1683_s3 = inlined_call_operand.vmem [shape: f32[384,1], index: 3, kind: input, shape index: {}, may-alias: {1,3}]   ;;  %s1684_s4 = inlined_call_operand.vmem [shape: bf16[128,128], index: 4, kind: input, shape index: {}]   ;;  %s1685_s5 = inlined_call_operand.vmem [shape: f32[1,128], index: 5, kind: input, shape index: {}]   ;;  %s1686_s6 = inlined_call_operand.vmem [shape: f32[384,128], index: 6, kind: output, shape index: {}]  }
   0x1   :  { %s1457_s23 = smov 0   ;;  %s1459_s24 = smov 0  }
   0x2   :  { %s1461_s25 = smov 0   ;;  %s1463_s26 = smov 0  }
   0x3   :  { %s1465_s27 = smov 0  }
   0x4 LB: > { %s25_s28 = sadd.s32 1, %s1405_s25  ;;  %s28_s29 = sadd.s32 1, %s1409_s26  ;;  %s1413_s27 = sphi %s1465_s27, %s16_s27   ;;  %s1409_s26 = sphi %s1463_s26, %s1692_s26   ;;  %s1405_s25 = sphi %s1461_s25, %s1691_s25   ;;  %s1401_s24 = sphi %s1459_s24, %s1690_s24   ;;  %s1397_s23 = sphi %s1457_s23, %s1689_s23   ;;  %s1393_s22 = sphi %s1455_s22, %s1688_s22   ;;  %s1389_s21 = sphi %s1453_s21, %s1687_s21  }
   0x5   : > { %p26_p0 = scmp.ge.s32.totalorder %s25_s28, 3  ;;  %p44_p1 = scmp.ne.s32.totalorder %s1393_s22, %s1389_s21 }
   0x6   : > { %p45_p2 = scmp.eq.s32.totalorder %s1413_s27, 0  ;;  %s37_s9 = sadd.s32 1, %s1393_s22 }
   0x7   : > { %s1694_s28 = smov (%p26_p0, %s25_s28), 0  ;;  %s1696_s29 = smov (!%p26_p0, %s28_s29), %s1409_s26 }
   0x8   : > { %p46_p3 = por %p45_p2, %p44_p1  ;;  %p30_p4 = scmp.ge.s32.totalorder %s1696_s29, 3 }
   0x9   : > { %s33_s30 = ssub.s32 %s1405_s25, %s1694_s28  ;;  %p1145_p6 = scmp.ge.s32.totalorder %s1413_s27, 9 }
   0xa   : > { %s1698_s29 = smov (%p30_p4, %s1696_s29), 0 }
   0xb   : > { %s32_s7 = ssub.s32 %s1409_s26, %s1698_s29  ;;  %222 = sbr.rel (%p1145_p6) target bundleno = 39 (0x27), region = 24 }
   0xc   : > { %s34_s8 = sor.u32 %s33_s30, %s32_s7 }
   0xd   : > { %p35_p5 = scmp.eq.s32.totalorder %s34_s8, 0 }
   0xf   : > { %s1504_s10 = scalar_select %p35_p5, %s1393_s22, %s37_s9  }
  0x10   : > { %225 = sbr.rel (!%p46_p3) target bundleno = 39 (0x27), region = 28  ;;  %s227_s11 = sand.u32 (%p46_p3), 1, %s1393_s22  }
  0x11   : > { %s1292_s12 = smul.u32 (%p46_p3), 48, %s1409_s26  ;;  %s1146_s13 = sshll.u32 (%p46_p3), %s227_s11, 6 }
  0x12   : > { %s229_s19 = scalar_lea.vmem (%p46_p3), [#allocation3], %s1146_s13 }
  0x13   : > { %s232_s14 = sadd.s32 (%p46_p3), %s1405_s25, %s1292_s12 }
  0x14   : > { %s1149_s15 = sshll.u32 (%p46_p3), %s232_s14, 2 }
  0x15   : > { %s1513_s18 = scalar_lea.vmem %s1680_s0, %s1149_s15 }
  0x16   : > { %v251_v0 = vld [vmem:[%s1513_s18] sm:$0xf]  ;;  %v253_v1 = vld [vmem:[%s1513_s18 + $0xc] sm:$0xf]  ;;  %v255_v2 = vld [vmem:[%s1513_s18 + $0x18] sm:$0xf] }
  0x17   : > { %252 = vst [vmem:[%s229_s19] sm:$0xf] %v251_v0  ;;  %v257_v3 = vld [vmem:[%s1513_s18 + $0x24] sm:$0xf]  ;;  %v259_v4 = vld [vmem:[%s1513_s18 + $0x30] sm:$0xf] }
  0x18   : > { %254 = vst [vmem:[%s229_s19 + $0x4] sm:$0xf] %v253_v1  ;;  %v261_v5 = vld [vmem:[%s1513_s18 + $0x3c] sm:$0xf]  ;;  %v263_v6 = vld [vmem:[%s1513_s18 + $0x48] sm:$0xf] }
  0x19   : > { %256 = vst [vmem:[%s229_s19 + $0x8] sm:$0xf] %v255_v2  ;;  %v265_v7 = vld [vmem:[%s1513_s18 + $0x54] sm:$0xf]  ;;  %v267_v8 = vld [vmem:[%s1513_s18 + $0x60] sm:$0xf] }
  0x1a   : > { %258 = vst [vmem:[%s229_s19 + $0xc] sm:$0xf] %v257_v3  ;;  %v269_v9 = vld [vmem:[%s1513_s18 + $0x6c] sm:$0xf]  ;;  %v271_v10 = vld [vmem:[%s1513_s18 + $0x78] sm:$0xf] }
  0x1b   : > { %260 = vst [vmem:[%s229_s19 + $0x10] sm:$0xf] %v259_v4  ;;  %v273_v11 = vld [vmem:[%s1513_s18 + $0x84] sm:$0xf]  ;;  %v275_v12 = vld [vmem:[%s1513_s18 + $0x90] sm:$0xf] }
  0x1c   : > { %262 = vst [vmem:[%s229_s19 + $0x14] sm:$0xf] %v261_v5  ;;  %v277_v13 = vld [vmem:[%s1513_s18 + $0x9c] sm:$0xf]  ;;  %v279_v14 = vld [vmem:[%s1513_s18 + $0xa8] sm:$0xf] }
  0x1d   : > { %264 = vst [vmem:[%s229_s19 + $0x18] sm:$0xf] %v263_v6  ;;  %v281_v15 = vld [vmem:[%s1513_s18 + $0xb4] sm:$0xf] }
  0x1e   : > { %266 = vst [vmem:[%s229_s19 + $0x1c] sm:$0xf] %v265_v7 }
  0x1f   : > { %268 = vst [vmem:[%s229_s19 + $0x20] sm:$0xf] %v267_v8 }
  0x20   : > { %270 = vst [vmem:[%s229_s19 + $0x24] sm:$0xf] %v269_v9 }
  0x21   : > { %272 = vst [vmem:[%s229_s19 + $0x28] sm:$0xf] %v271_v10 }
  0x22   : > { %274 = vst [vmem:[%s229_s19 + $0x2c] sm:$0xf] %v273_v11 }
  0x23   : > { %276 = vst [vmem:[%s229_s19 + $0x30] sm:$0xf] %v275_v12 }
  0x24   : > { %278 = vst [vmem:[%s229_s19 + $0x34] sm:$0xf] %v277_v13 }
  0x25   : > { %280 = vst [vmem:[%s229_s19 + $0x38] sm:$0xf] %v279_v14 }
  0x26   : > { %282 = vst [vmem:[%s229_s19 + $0x3c] sm:$0xf] %v281_v15 }
  0x27 PF: > { %p1150_p7 = scmp.ge.s32.totalorder %s1413_s27, 1  ;;  %p364_p8 = scmp.lt.s32.totalorder %s1413_s27, 10 }
  0x29   : > { %p365_p9 = pnand %p1150_p7, %p364_p8 }
  0x2a   : > { %s371_s20 = sand.u32 (!%p365_p9), 1, %s1389_s21   ;;  %s1152_s30 = sshll.u32 (!%p365_p9), %s1397_s23, 4 }
  0x2b   : > { %368 = sbr.rel (%p365_p9) target bundleno = 699 (0x2bb), region = 81  ;;  %s1151_s7 = sshll.u32 (!%p365_p9), %s371_s20, 6 }
  0x2c   : > { %p417_p10 = scmp.lt.s32.totalorder (!%p365_p9), %s1152_s30, 47  ;;  %s1156_s8 = sshll.u32 (!%p365_p9), %s1401_s24, 4 }
  0x2d   : > { %p429_p11 = scmp.lt.s32.totalorder (!%p365_p9), %s1156_s8, 47  ;;  %s1556_s11 = scalar_lea.vmem (!%p365_p9), [#allocation3], %s1151_s7 }
  0x2e   : > { %p1160_p12 = scmp.ne.s32.totalorder (!%p365_p9), %s1397_s23, 0 }
  0x30   : > { %s1700_s30 = smov (!%p417_p10, %s1152_s30), 47  ;;  %s1702_s8 = smov (!%p429_p11, %s1156_s8), 47 }
  0x31   : > { %s1153_s9 = sshll.u32 %s1700_s30, 3  ;;  %s1157_s17 = sshll.u32 %s1702_s8, 3 }
  0x32   : > { %s1539_s13 = scalar_lea.vmem %s1681_s1, %s1153_s9  ;;  %s1544_s16 = scalar_lea.vmem %s1682_s2, %s1153_s9 }
  0x33   : > { %s1549_s19 = scalar_lea.vmem %s1683_s3, %s1157_s17  ;;  %s1554_s30 = scalar_lea.vmem %s1686_s6, %s1157_s17 }
  0x34   : > { %443 = sbr.rel (%p1160_p12) target bundleno = 74 (0x4a), region = 89 }
  0x39   : > { %v1415_v16 = vmov 0.0  }
  0x3a   : > { %444 = vst [vmem:[#allocation2 + $0x30] sm:$0xff] %v1415_v16 }
  0x3b   : > { %445 = vst [vmem:[#allocation2] sm:$0xff] %v1415_v16 }
  0x3c   : > { %446 = vst [vmem:[#allocation2 + $0x58] sm:$0xff] %v1415_v16 }
  0x3d   : > { %447 = vst [vmem:[#allocation2 + $0x18] sm:$0xff] %v1415_v16 }
  0x3e   : > { %448 = vst [vmem:[#allocation2 + $0x50] sm:$0xff] %v1415_v16 }
  0x3f   : > { %449 = vst [vmem:[#allocation2 + $0x68] sm:$0xff] %v1415_v16 }
  0x40   : > { %450 = vst [vmem:[#allocation2 + $0x8] sm:$0xff] %v1415_v16 }
  0x41   : > { %451 = vst [vmem:[#allocation2 + $0x48] sm:$0xff] %v1415_v16 }
  0x42   : > { %452 = vst [vmem:[#allocation2 + $0x40] sm:$0xff] %v1415_v16 }
  0x43   : > { %453 = vst [vmem:[#allocation2 + $0x20] sm:$0xff] %v1415_v16 }
  0x44   : > { %454 = vst [vmem:[#allocation2 + $0x10] sm:$0xff] %v1415_v16 }
  0x45   : > { %455 = vst [vmem:[#allocation2 + $0x38] sm:$0xff] %v1415_v16 }
  0x46   : > { %456 = vst [vmem:[#allocation2 + $0x60] sm:$0xff] %v1415_v16 }
  0x47   : > { %457 = vst [vmem:[#allocation2 + $0x70] sm:$0xff] %v1415_v16 }
  0x48   : > { %458 = vst [vmem:[#allocation2 + $0x78] sm:$0xff] %v1415_v16 }
  0x49   : > { %459 = vst [vmem:[#allocation2 + $0x28] sm:$0xff] %v1415_v16 }
  0x4a PF: > { %v490_v17 = vld [vmem:[%s1539_s13 + $0x70] sm:$0xff]  ;;  %v488_v18 = vld [vmem:[%s1539_s13 + $0x60] sm:$0xff]  ;;  %v1416_v20 = vmov 0   ;;  %v489_v21 = vld [vmem:[%s1539_s13 + $0x68] sm:$0xff]  ;;  %p1193_p13 = scmp.ne.s32.totalorder %s1397_s23, 2 }
  0x4b   : > { %v486_v19 = vld [vmem:[%s1539_s13 + $0x50] sm:$0xff]  ;;  %1354 = vset.pattern.permute.xlu2 %v1416_v20  ;;  %1353 = vset.pattern.permute.xlu1 %v1416_v20  ;;  %v491_v22 = vld [vmem:[%s1539_s13 + $0x78] sm:$0xff]  ;;  %v485_v24 = vld [vmem:[%s1539_s13 + $0x48] sm:$0xff] }
  0x4c   : > { %1352 = vset.pattern.permute.xlu0 %v1416_v20  ;;  %554 = vperm.xlu1 %1353, %v488_v18   ;;  %v487_v23 = vld [vmem:[%s1539_s13 + $0x58] sm:$0xff]  ;;  %v484_v25 = vld [vmem:[%s1539_s13 + $0x40] sm:$0xff]  ;;  %v482_v26 = vld [vmem:[%s1539_s13 + $0x30] sm:$0xff] }
  0x4d   : > { %564 = vperm.xlu0 %1352, %v490_v17   ;;  %544 = vperm.xlu2 %1354, %v486_v19   ;;  %v480_v27 = vld [vmem:[%s1539_s13 + $0x20] sm:$0xff]  ;;  %v483_v28 = vld [vmem:[%s1539_s13 + $0x38] sm:$0xff]  ;;  %v481_v29 = vld [vmem:[%s1539_s13 + $0x28] sm:$0xff] }
  0x4e   : > { %v479_v30 = vld [vmem:[%s1539_s13 + $0x18] sm:$0xff]  ;;  %v478_v31 = vld [vmem:[%s1539_s13 + $0x10] sm:$0xff]  ;;  %v476_v32 = vld [vmem:[%s1539_s13] sm:$0xff] }
  0x4f   : > { %v477_v33 = vld [vmem:[%s1539_s13 + $0x8] sm:$0xff]  ;;  %v474_v37 = vld [vmem:[%s1544_s16 + $0x70] sm:$0xff]  ;;  %v475_v38 = vld [vmem:[%s1544_s16 + $0x78] sm:$0xff] }
  0x50   : > { %v473_v42 = vld [vmem:[%s1544_s16 + $0x68] sm:$0xff]  ;;  %v472_v45 = vld [vmem:[%s1544_s16 + $0x60] sm:$0xff]  ;;  %v470_v48 = vld [vmem:[%s1544_s16 + $0x50] sm:$0xff] }
  0x51   : > { %v471_v49 = vld [vmem:[%s1544_s16 + $0x58] sm:$0xff]  ;;  %v469_v55 = vld [vmem:[%s1544_s16 + $0x48] sm:$0xff]  ;;  %v468_v57 = vld [vmem:[%s1544_s16 + $0x40] sm:$0xff] }
  0x52   : > { %v466_v62 = vld [vmem:[%s1544_s16 + $0x30] sm:$0xff]  ;;  %v467_v63 = vld [vmem:[%s1544_s16 + $0x38] sm:$0xff]  ;;  %v464_v3 = vld [vmem:[%s1544_s16 + $0x20] sm:$0xff] }
  0x53   : > { %v465_v6 = vld [vmem:[%s1544_s16 + $0x28] sm:$0xff]  ;;  %v463_v11 = vld [vmem:[%s1544_s16 + $0x18] sm:$0xff]  ;;  %v462_v12 = vld [vmem:[%s1544_s16 + $0x10] sm:$0xff] }
  0x54   : > { %559 = vperm.xlu1 %1353, %v489_v21   ;;  %v460_v20 = vld [vmem:[%s1544_s16] sm:$0xff]  ;;  %v461_v21 = vld [vmem:[%s1544_s16 + $0x8] sm:$0xff] }
  0x55   : > { %569 = vperm.xlu0 %1352, %v491_v22   ;;  %549 = vperm.xlu2 %1354, %v487_v23  }
  0x5c   : > { %539 = vperm.xlu1 %1353, %v485_v24  }
  0x5d   : > { %534 = vperm.xlu0 %1352, %v484_v25   ;;  %524 = vperm.xlu2 %1354, %v482_v26   ;;  %v1228_v26 = vld [vmem:[%s1556_s11] sm:$0xff] }
  0x64   : > { %514 = vperm.xlu1 %1353, %v480_v27   ;;  %v1230_v27 = vld [vmem:[%s1556_s11 + $0x10] sm:$0xff] }
  0x65   : > { %529 = vperm.xlu0 %1352, %v483_v28   ;;  %519 = vperm.xlu2 %1354, %v481_v29   ;;  %v1232_v28 = vld [vmem:[%s1556_s11 + $0x20] sm:$0xff]  ;;  %v1234_v29 = vld [vmem:[%s1556_s11 + $0x30] sm:$0xff] }
  0x6c   : > { %509 = vperm.xlu1 %1353, %v479_v30   ;;  %v1229_v30 = vld [vmem:[%s1556_s11 + $0x8] sm:$0xff] }
  0x6d   : > { %504 = vperm.xlu0 %1352, %v478_v31   ;;  %494 = vperm.xlu2 %1354, %v476_v32   ;;  %v1231_v31 = vld [vmem:[%s1556_s11 + $0x18] sm:$0xff]  ;;  %v1233_v32 = vld [vmem:[%s1556_s11 + $0x28] sm:$0xff] }
  0x75   : > { %499 = vperm.xlu0 %1352, %v477_v33   ;;  %v1235_v33 = vld [vmem:[%s1556_s11 + $0x38] sm:$0xff] }
  0xa7   : > { %v545_v34 = vpop.permute.xlu2 %544 }
  0xa8   : > { %v582_v51 = vmul.f32 %v545_v34, %v470_v48  ;;  %v596_v34 = vld [vmem:[#allocation2 + $0x30] sm:$0xff] }
  0xaf   : > { %v550_v40 = vpop.permute.xlu2 %549 }
  0xb0   : > { %v583_v52 = vmul.f32 %v550_v40, %v471_v49  ;;  %v604_v40 = vld [vmem:[#allocation2 + $0x40] sm:$0xff] }
  0xb2   : > { %v593_v59 = vpack.c.bf16 %v583_v52, %v582_v51  ;;  %v605_v52 = vld [vmem:[#allocation2 + $0x20] sm:$0xff] }
  0xb7   : > { %v525_v58 = vpop.permute.xlu2 %524 }
  0xb8   : > { %v578_v4 = vmul.f32 %v525_v58, %v466_v62 }
  0xbe   : > { %v555_v35 = vpop.permute.xlu1 %554 }
  0xbf   : > { %v565_v36 = vpop.permute.xlu0 %564  ;;  %v584_v50 = vmul.f32 %v555_v35, %v472_v45  ;;  %v520_v9 = vpop.permute.xlu2 %519  ;;  %v600_v35 = vld [vmem:[#allocation2 + $0x50] sm:$0xff] }
  0xc0   : > { %v586_v43 = vmul.f32 %v565_v36, %v474_v37  ;;  %v577_v10 = vmul.f32 %v520_v9, %v465_v6 }
  0xc6   : > { %v560_v39 = vpop.permute.xlu1 %559 }
  0xc7   : > { %v570_v41 = vpop.permute.xlu0 %569  ;;  %v585_v47 = vmul.f32 %v560_v39, %v473_v42  ;;  %v495_v19 = vpop.permute.xlu2 %494  ;;  %v597_v42 = vld [vmem:[#allocation2] sm:$0xff] }
  0xc8   : > { %v587_v44 = vmul.f32 %v570_v41, %v475_v38  ;;  %v572_v23 = vmul.f32 %v495_v19, %v460_v20  ;;  %v608_v41 = vld [vmem:[#allocation2 + $0x60] sm:$0xff] }
  0xc9   : > { %v594_v53 = vpack.c.bf16 %v585_v47, %v584_v50 }
  0xca   : > { %v595_v46 = vpack.c.bf16 %v587_v44, %v586_v43  ;;  %v601_v43 = vld [vmem:[#allocation2 + $0x68] sm:$0xff] }
  0xcc   : > { %676 = vmatpush.bf16.msra.mxu0 %v595_v46  ;;  %1244 = vmatpush.bf16.msra.mxu1 %v595_v46 }
  0xcd   : > { %1245 = vmatpush.bf16.msra.mxu2 %v595_v46  ;;  %1246 = vmatpush.bf16.msra.mxu3 %v595_v46 }
  0xce   : > { %v540_v54 = vpop.permute.xlu1 %539 }
  0xcf   : > { %v535_v56 = vpop.permute.xlu0 %534  ;;  %v581_v60 = vmul.f32 %v540_v54, %v469_v55  ;;  %v598_v54 = vld [vmem:[#allocation2 + $0x58] sm:$0xff]  ;;  %v602_v55 = vld [vmem:[#allocation2 + $0x8] sm:$0xff] }
  0xd0   : > { %677 = vmatpush.bf16.msra.mxu0 %v594_v53  ;;  %1247 = vmatpush.bf16.msra.mxu1 %v594_v53  ;;  %v580_v61 = vmul.f32 %v535_v56, %v468_v57 }
  0xd1   : > { %1248 = vmatpush.bf16.msra.mxu2 %v594_v53  ;;  %1249 = vmatpush.bf16.msra.mxu3 %v594_v53  ;;  %v609_v53 = vld [vmem:[#allocation2 + $0x70] sm:$0xff] }
  0xd2   : > { %v592_v0 = vpack.c.bf16 %v581_v60, %v580_v61 }
  0xd4   : > { %678 = vmatpush.bf16.msra.mxu0 %v593_v59  ;;  %1250 = vmatpush.bf16.msra.mxu1 %v593_v59 }
  0xd5   : > { %1251 = vmatpush.bf16.msra.mxu2 %v593_v59  ;;  %1252 = vmatpush.bf16.msra.mxu3 %v593_v59 }
  0xd6   : > { %v515_v1 = vpop.permute.xlu1 %514 }
  0xd7   : > { %v530_v2 = vpop.permute.xlu0 %529  ;;  %v576_v8 = vmul.f32 %v515_v1, %v464_v3  ;;  %v610_v1 = vld [vmem:[#allocation2 + $0x78] sm:$0xff]  ;;  %v603_v3 = vld [vmem:[#allocation2 + $0x48] sm:$0xff] }
  0xd8   : > { %v579_v5 = vmul.f32 %v530_v2, %v467_v63  ;;  %679 = vmatpush.bf16.msra.mxu0 %v592_v0  ;;  %1253 = vmatpush.bf16.msra.mxu1 %v592_v0  ;;  %v599_v2 = vld [vmem:[#allocation2 + $0x18] sm:$0xff] }
  0xd9   : > { %1254 = vmatpush.bf16.msra.mxu2 %v592_v0  ;;  %1255 = vmatpush.bf16.msra.mxu3 %v592_v0  ;;  %v590_v13 = vpack.c.bf16 %v577_v10, %v576_v8  ;;  %v606_v0 = vld [vmem:[#allocation2 + $0x10] sm:$0xff] }
  0xda   : > { %v591_v7 = vpack.c.bf16 %v579_v5, %v578_v4 }
  0xdc   : > { %680 = vmatpush.bf16.msra.mxu0 %v591_v7  ;;  %1256 = vmatpush.bf16.msra.mxu1 %v591_v7 }
  0xdd   : > { %1257 = vmatpush.bf16.msra.mxu2 %v591_v7  ;;  %1258 = vmatpush.bf16.msra.mxu3 %v591_v7 }
  0xde   : > { %v510_v14 = vpop.permute.xlu1 %509 }
  0xdf   : > { %v575_v15 = vmul.f32 %v510_v14, %v463_v11  ;;  %v505_v16 = vpop.permute.xlu0 %504 }
  0xe0   : > { %v574_v17 = vmul.f32 %v505_v16, %v462_v12  ;;  %681 = vmatpush.bf16.msra.mxu0 %v590_v13  ;;  %1259 = vmatpush.bf16.msra.mxu1 %v590_v13  ;;  %v607_v12 = vld [vmem:[#allocation2 + $0x38] sm:$0xff] }
  0xe1   : > { %1260 = vmatpush.bf16.msra.mxu2 %v590_v13  ;;  %1261 = vmatpush.bf16.msra.mxu3 %v590_v13  ;;  %v611_v13 = vld [vmem:[#allocation2 + $0x28] sm:$0xff] }
  0xe2   : > { %v589_v18 = vpack.c.bf16 %v575_v15, %v574_v17 }
  0xe4   : > { %682 = vmatpush.bf16.msra.mxu0 %v589_v18  ;;  %1262 = vmatpush.bf16.msra.mxu1 %v589_v18 }
  0xe5   : > { %1263 = vmatpush.bf16.msra.mxu2 %v589_v18  ;;  %1264 = vmatpush.bf16.msra.mxu3 %v589_v18 }
  0xe7   : > { %v500_v22 = vpop.permute.xlu0 %499 }
  0xe8   : > { %v573_v24 = vmul.f32 %v500_v22, %v461_v21 }
  0xea   : > { %v588_v25 = vpack.c.bf16 %v573_v24, %v572_v23 }
  0xec   : > { %683 = vmatpush.bf16.msra.mxu0 %v588_v25  ;;  %1265 = vmatpush.bf16.msra.mxu1 %v588_v25 }
  0xed   : > { %1266 = vmatpush.bf16.msra.mxu2 %v588_v25  ;;  %1267 = vmatpush.bf16.msra.mxu3 %v588_v25 }
  0xef   : > { %684 = vmatmul.bf16.vlgmr.msra.gmra.mxu0 %v1228_v26  ;;  %694 = vmatmul.bf16.vlgmr.msra.gmra.mxu1 %v1230_v27 }
  0xf0   : > { %704 = vmatmul.bf16.vlgmr.msra.gmra.mxu2 %v1232_v28  ;;  %714 = vmatmul.bf16.vlgmr.msra.gmra.mxu3 %v1234_v29 }
  0xff   : > { %689 = vmatmul.bf16.gmra.mxu0 %v1229_v30  ;;  %699 = vmatmul.bf16.gmra.mxu1 %v1231_v31 }
 0x100   : > { %709 = vmatmul.bf16.gmra.mxu2 %v1233_v32  ;;  %719 = vmatmul.bf16.gmra.mxu3 %v1235_v33 }
 0x16c   : > { %v685_v36 = vpop.f32.mrf.mxu0  ;;  %v695_v37 = vpop.f32.mrf.mxu1 }
 0x16d   : > { %v725_v38 = vadd.f32 %v685_v36, %v596_v34  ;;  %v729_v39 = vadd.f32 %v695_v37, %v600_v35 }
 0x16f   : > { %741 = vst [vmem:[#allocation2 + $0x30] sm:$0xff] %v725_v38 }
 0x170   : > { %745 = vst [vmem:[#allocation2 + $0x50] sm:$0xff] %v729_v39 }
 0x173   : > { %v705_v44 = vpop.f32.mrf.mxu2  ;;  %v715_v45 = vpop.f32.mrf.mxu3 }
 0x174   : > { %v733_v46 = vadd.f32 %v705_v44, %v604_v40  ;;  %v737_v47 = vadd.f32 %v715_v45, %v608_v41  ;;  %v687_v48 = vpop.f32.mrf.mxu0  ;;  %v697_v49 = vpop.f32.mrf.mxu1 }
 0x175   : > { %v726_v50 = vadd.f32 %v687_v48, %v597_v42  ;;  %v730_v51 = vadd.f32 %v697_v49, %v601_v43 }
 0x176   : > { %749 = vst [vmem:[#allocation2 + $0x40] sm:$0xff] %v733_v46 }
 0x177   : > { %753 = vst [vmem:[#allocation2 + $0x60] sm:$0xff] %v737_v47 }
 0x178   : > { %742 = vst [vmem:[#allocation2] sm:$0xff] %v726_v50 }
 0x179   : > { %746 = vst [vmem:[#allocation2 + $0x68] sm:$0xff] %v730_v51 }
 0x17b   : > { %v707_v56 = vpop.f32.mrf.mxu2  ;;  %v717_v57 = vpop.f32.mrf.mxu3 }
 0x17c   : > { %v734_v58 = vadd.f32 %v707_v56, %v605_v52  ;;  %v738_v59 = vadd.f32 %v717_v57, %v609_v53  ;;  %v690_v60 = vpop.f32.mrf.mxu0  ;;  %v700_v61 = vpop.f32.mrf.mxu1 }
 0x17d   : > { %v727_v62 = vadd.f32 %v690_v60, %v598_v54  ;;  %v731_v63 = vadd.f32 %v700_v61, %v602_v55 }
 0x17e   : > { %750 = vst [vmem:[#allocation2 + $0x20] sm:$0xff] %v734_v58 }
 0x17f   : > { %754 = vst [vmem:[#allocation2 + $0x70] sm:$0xff] %v738_v59 }
 0x180   : > { %743 = vst [vmem:[#allocation2 + $0x58] sm:$0xff] %v727_v62 }
 0x181   : > { %747 = vst [vmem:[#allocation2 + $0x8] sm:$0xff] %v731_v63 }
 0x183   : > { %v710_v4 = vpop.f32.mrf.mxu2  ;;  %v720_v5 = vpop.f32.mrf.mxu3 }
 0x184   : > { %v735_v6 = vadd.f32 %v710_v4, %v606_v0  ;;  %v739_v7 = vadd.f32 %v720_v5, %v610_v1  ;;  %v692_v8 = vpop.f32.mrf.mxu0  ;;  %v702_v9 = vpop.f32.mrf.mxu1 }
 0x185   : > { %v728_v10 = vadd.f32 %v692_v8, %v599_v2  ;;  %v732_v11 = vadd.f32 %v702_v9, %v603_v3 }
 0x186   : > { %751 = vst [vmem:[#allocation2 + $0x10] sm:$0xff] %v735_v6 }
 0x187   : > { %755 = vst [vmem:[#allocation2 + $0x78] sm:$0xff] %v739_v7 }
 0x188   : > { %744 = vst [vmem:[#allocation2 + $0x18] sm:$0xff] %v728_v10 }
 0x189   : > { %748 = vst [vmem:[#allocation2 + $0x48] sm:$0xff] %v732_v11 }
 0x18b   : > { %v712_v14 = vpop.f32.mrf.mxu2  ;;  %v722_v15 = vpop.f32.mrf.mxu3  ;;  %760 = sbr.rel (%p1193_p13) target bundleno = 699 (0x2bb), region = 93 }
 0x18c   : > { %v736_v16 = vadd.f32 %v712_v14, %v607_v12  ;;  %v740_v17 = vadd.f32 %v722_v15, %v611_v13 }
 0x18e   : > { %752 = vst [vmem:[#allocation2 + $0x38] sm:$0xff] %v736_v16 }
 0x18f   : > { %756 = vst [vmem:[#allocation2 + $0x28] sm:$0xff] %v740_v17 }
 0x190   : > { %v789_v18 = vld [vmem:[%s1549_s19 + $0x60] sm:$0xff]  ;;  %v1417_v21 = vmov 0   ;;  %v790_v22 = vld [vmem:[%s1549_s19 + $0x68] sm:$0xff]  ;;  %v1243_v25 = vld [vmem:[%s1684_s4 + $0x38] sm:$0xff] }
 0x191   : > { %v785_v19 = vld [vmem:[%s1549_s19 + $0x40] sm:$0xff]  ;;  %1357 = vset.pattern.permute.xlu2 %v1417_v21  ;;  %1356 = vset.pattern.permute.xlu1 %v1417_v21  ;;  %v786_v23 = vld [vmem:[%s1549_s19 + $0x48] sm:$0xff]  ;;  %v787_v28 = vld [vmem:[%s1549_s19 + $0x50] sm:$0xff] }
 0x192   : > { %v777_v20 = vld [vmem:[%s1549_s19] sm:$0xff]  ;;  %1355 = vset.pattern.permute.xlu0 %v1417_v21  ;;  %855 = vperm.xlu1 %1356, %v789_v18   ;;  %v778_v24 = vld [vmem:[%s1549_s19 + $0x8] sm:$0xff]  ;;  %v791_v29 = vld [vmem:[%s1549_s19 + $0x70] sm:$0xff] }
 0x193   : > { %835 = vperm.xlu0 %1355, %v785_v19   ;;  %795 = vperm.xlu2 %1357, %v777_v20   ;;  %v782_v26 = vld [vmem:[%s1549_s19 + $0x28] sm:$0xff]  ;;  %v781_v27 = vld [vmem:[%s1549_s19 + $0x20] sm:$0xff]  ;;  %v788_v30 = vld [vmem:[%s1549_s19 + $0x58] sm:$0xff] }
 0x194   : > { %965 = vmatpush.bf16.msra.mxu0 %v1243_v25  ;;  %1269 = vmatpush.bf16.msra.mxu2 %v1243_v25  ;;  %v792_v31 = vld [vmem:[%s1549_s19 + $0x78] sm:$0xff]  ;;  %v779_v33 = vld [vmem:[%s1549_s19 + $0x10] sm:$0xff]  ;;  %v1241_v37 = vld [vmem:[%s1684_s4 + $0x28] sm:$0xff] }
 0x195   : > { %1270 = vmatpush.bf16.msra.mxu3 %v1243_v25  ;;  %1268 = vmatpush.bf16.msra.mxu1 %v1243_v25  ;;  %v780_v32 = vld [vmem:[%s1549_s19 + $0x18] sm:$0xff]  ;;  %v783_v34 = vld [vmem:[%s1549_s19 + $0x30] sm:$0xff]  ;;  %v1240_v38 = vld [vmem:[%s1684_s4 + $0x20] sm:$0xff] }
 0x196   : > { %v784_v35 = vld [vmem:[%s1549_s19 + $0x38] sm:$0xff]  ;;  %v1242_v36 = vld [vmem:[%s1684_s4 + $0x30] sm:$0xff]  ;;  %v1237_v41 = vld [vmem:[%s1684_s4 + $0x8] sm:$0xff] }
 0x197   : > { %v1239_v39 = vld [vmem:[%s1684_s4 + $0x18] sm:$0xff]  ;;  %v1238_v40 = vld [vmem:[%s1684_s4 + $0x10] sm:$0xff]  ;;  %v1236_v42 = vld [vmem:[%s1684_s4] sm:$0xff] }
 0x198   : > { %966 = vmatpush.bf16.msra.mxu0 %v1242_v36  ;;  %1272 = vmatpush.bf16.msra.mxu2 %v1242_v36  ;;  %v761_v44 = vld [vmem:[#allocation2 + $0x30] sm:$0xff]  ;;  %v762_v45 = vld [vmem:[#allocation2] sm:$0xff]  ;;  %v766_v1 = vld [vmem:[#allocation2 + $0x68] sm:$0xff] }
 0x199   : > { %1273 = vmatpush.bf16.msra.mxu3 %v1242_v36  ;;  %1271 = vmatpush.bf16.msra.mxu1 %v1242_v36  ;;  %v773_v52 = vld [vmem:[#allocation2 + $0x60] sm:$0xff]  ;;  %v774_v53 = vld [vmem:[#allocation2 + $0x70] sm:$0xff]  ;;  %v776_v8 = vld [vmem:[#allocation2 + $0x28] sm:$0xff] }
 0x19a   : > { %860 = vperm.xlu1 %1356, %v790_v22   ;;  %v769_v55 = vld [vmem:[#allocation2 + $0x40] sm:$0xff]  ;;  %v765_v2 = vld [vmem:[#allocation2 + $0x50] sm:$0xff]  ;;  %v775_v9 = vld [vmem:[#allocation2 + $0x78] sm:$0xff] }
 0x19b   : > { %840 = vperm.xlu0 %1355, %v786_v23   ;;  %800 = vperm.xlu2 %1357, %v778_v24   ;;  %v770_v56 = vld [vmem:[#allocation2 + $0x20] sm:$0xff]  ;;  %v771_v10 = vld [vmem:[#allocation2 + $0x10] sm:$0xff]  ;;  %v772_v11 = vld [vmem:[#allocation2 + $0x38] sm:$0xff] }
 0x19c   : > { %967 = vmatpush.bf16.msra.mxu0 %v1241_v37  ;;  %1275 = vmatpush.bf16.msra.mxu2 %v1241_v37  ;;  %v764_v21 = vld [vmem:[#allocation2 + $0x18] sm:$0xff] }
 0x19d   : > { %1276 = vmatpush.bf16.msra.mxu3 %v1241_v37  ;;  %1274 = vmatpush.bf16.msra.mxu1 %v1241_v37  ;;  %v763_v22 = vld [vmem:[#allocation2 + $0x58] sm:$0xff] }
 0x1a0   : > { %968 = vmatpush.bf16.msra.mxu0 %v1240_v38  ;;  %1278 = vmatpush.bf16.msra.mxu2 %v1240_v38 }
 0x1a1   : > { %1279 = vmatpush.bf16.msra.mxu3 %v1240_v38  ;;  %1277 = vmatpush.bf16.msra.mxu1 %v1240_v38 }
 0x1a2   : > { %820 = vperm.xlu1 %1356, %v782_v26  }
 0x1a3   : > { %815 = vperm.xlu0 %1355, %v781_v27   ;;  %845 = vperm.xlu2 %1357, %v787_v28  }
 0x1a4   : > { %969 = vmatpush.bf16.msra.mxu0 %v1239_v39  ;;  %1281 = vmatpush.bf16.msra.mxu2 %v1239_v39 }
 0x1a5   : > { %1282 = vmatpush.bf16.msra.mxu3 %v1239_v39  ;;  %1280 = vmatpush.bf16.msra.mxu1 %v1239_v39 }
 0x1a8   : > { %970 = vmatpush.bf16.msra.mxu0 %v1238_v40  ;;  %1284 = vmatpush.bf16.msra.mxu2 %v1238_v40 }
 0x1a9   : > { %1285 = vmatpush.bf16.msra.mxu3 %v1238_v40  ;;  %1283 = vmatpush.bf16.msra.mxu1 %v1238_v40 }
 0x1aa   : > { %865 = vperm.xlu1 %1356, %v791_v29   ;;  %v767_v29 = vld [vmem:[#allocation2 + $0x8] sm:$0xff] }
 0x1ab   : > { %850 = vperm.xlu0 %1355, %v788_v30   ;;  %870 = vperm.xlu2 %1357, %v792_v31   ;;  %v768_v30 = vld [vmem:[#allocation2 + $0x48] sm:$0xff] }
 0x1ac   : > { %971 = vmatpush.bf16.msra.mxu0 %v1237_v41  ;;  %1287 = vmatpush.bf16.msra.mxu2 %v1237_v41 }
 0x1ad   : > { %1288 = vmatpush.bf16.msra.mxu3 %v1237_v41  ;;  %1286 = vmatpush.bf16.msra.mxu1 %v1237_v41 }
 0x1b0   : > { %972 = vmatpush.bf16.msra.mxu0 %v1236_v42  ;;  %1290 = vmatpush.bf16.msra.mxu2 %v1236_v42 }
 0x1b1   : > { %1291 = vmatpush.bf16.msra.mxu3 %v1236_v42  ;;  %1289 = vmatpush.bf16.msra.mxu1 %v1236_v42 }
 0x1b2   : > { %810 = vperm.xlu1 %1356, %v780_v32  }
 0x1b3   : > { %805 = vperm.xlu0 %1355, %v779_v33   ;;  %825 = vperm.xlu2 %1357, %v783_v34  }
 0x1bb   : > { %830 = vperm.xlu0 %1355, %v784_v35   ;;  %v1358_v35 = vld [vmem:[%s1685_s5] ss:$0 sm:$0xff] }
 0x1ed   : > { %v796_v43 = vpop.permute.xlu2 %795 }
 0x1ee   : > { %v873_v46 = vmul.f32 %v796_v43, %v761_v44 }
 0x1f5   : > { %v801_v47 = vpop.permute.xlu2 %800 }
 0x1f6   : > { %v874_v48 = vmul.f32 %v801_v47, %v762_v45 }
 0x1f8   : > { %v889_v49 = vpack.c.bf16 %v874_v48, %v873_v46 }
 0x1fa   : > { %973 = vmatmul.bf16.vlgmr.msra.gmra.mxu0 %v889_v49 }
 0x1fd   : > { %v846_v0 = vpop.permute.xlu2 %845 }
 0x1fe   : > { %v883_v17 = vmul.f32 %v846_v0, %v771_v10 }
 0x204   : > { %v856_v50 = vpop.permute.xlu1 %855 }
 0x205   : > { %v836_v51 = vpop.permute.xlu0 %835  ;;  %v885_v54 = vmul.f32 %v856_v50, %v773_v52  ;;  %v871_v12 = vpop.permute.xlu2 %870 }
 0x206   : > { %v881_v60 = vmul.f32 %v836_v51, %v769_v55  ;;  %v888_v14 = vmul.f32 %v871_v12, %v776_v8 }
 0x20c   : > { %v861_v57 = vpop.permute.xlu1 %860 }
 0x20d   : > { %v886_v58 = vmul.f32 %v861_v57, %v774_v53  ;;  %v841_v59 = vpop.permute.xlu0 %840  ;;  %v826_v28 = vpop.permute.xlu2 %825 }
 0x20e   : > { %v882_v61 = vmul.f32 %v841_v59, %v770_v56  ;;  %v879_v32 = vmul.f32 %v826_v28, %v767_v29 }
 0x20f   : > { %v895_v62 = vpack.c.bf16 %v886_v58, %v885_v54 }
 0x210   : > { %v893_v63 = vpack.c.bf16 %v882_v61, %v881_v60 }
 0x211   : > { %1003 = vmatmul.bf16.vlgmr.msra.gmra.mxu3 %v895_v62 }
 0x212   : > { %993 = vmatmul.bf16.vlgmr.msra.gmra.mxu2 %v893_v63 }
 0x214   : > { %v821_v3 = vpop.permute.xlu1 %820 }
 0x215   : > { %v878_v4 = vmul.f32 %v821_v3, %v766_v1  ;;  %v816_v5 = vpop.permute.xlu0 %815 }
 0x216   : > { %v877_v6 = vmul.f32 %v816_v5, %v765_v2 }
 0x218   : > { %v891_v7 = vpack.c.bf16 %v878_v4, %v877_v6 }
 0x21a   : > { %983 = vmatmul.bf16.vlgmr.msra.gmra.mxu1 %v891_v7 }
 0x21c   : > { %v866_v13 = vpop.permute.xlu1 %865 }
 0x21d   : > { %v887_v15 = vmul.f32 %v866_v13, %v775_v9  ;;  %v851_v16 = vpop.permute.xlu0 %850 }
 0x21e   : > { %v884_v18 = vmul.f32 %v851_v16, %v772_v11 }
 0x21f   : > { %v896_v19 = vpack.c.bf16 %v888_v14, %v887_v15 }
 0x220   : > { %v894_v20 = vpack.c.bf16 %v884_v18, %v883_v17 }
 0x221   : > { %1008 = vmatmul.bf16.gmra.mxu3 %v896_v19 }
 0x222   : > { %998 = vmatmul.bf16.gmra.mxu2 %v894_v20 }
 0x224   : > { %v811_v23 = vpop.permute.xlu1 %810 }
 0x225   : > { %v876_v24 = vmul.f32 %v811_v23, %v764_v21  ;;  %v806_v25 = vpop.permute.xlu0 %805 }
 0x226   : > { %v875_v26 = vmul.f32 %v806_v25, %v763_v22 }
 0x228   : > { %v890_v27 = vpack.c.bf16 %v876_v24, %v875_v26 }
 0x22a   : > { %978 = vmatmul.bf16.gmra.mxu0 %v890_v27 }
 0x22d   : > { %v831_v31 = vpop.permute.xlu0 %830 }
 0x22e   : > { %v880_v33 = vmul.f32 %v831_v31, %v768_v30 }
 0x230   : > { %v892_v34 = vpack.c.bf16 %v880_v33, %v879_v32 }
 0x232   : > { %988 = vmatmul.bf16.gmra.mxu1 %v892_v34 }
 0x277   : > { %v974_v36 = vpop.f32.mrf.mxu0 }
 0x278   : > { %v975_v37 = vadd.f32 %v1358_v35, %v974_v36 }
 0x27a   : > { %1014 = vst [vmem:[%s1554_s30] sm:$0xff] %v975_v37 }
 0x27f   : > { %v976_v38 = vpop.f32.mrf.mxu0 }
 0x280   : > { %v977_v39 = vadd.f32 %v1358_v35, %v976_v38 }
 0x282   : > { %1015 = vst [vmem:[%s1554_s30 + $0x8] sm:$0xff] %v977_v39 }
 0x294   : > { %v1004_v40 = vpop.f32.mrf.mxu3 }
 0x295   : > { %v994_v41 = vpop.f32.mrf.mxu2  ;;  %v1005_v42 = vadd.f32 %v1358_v35, %v1004_v40 }
 0x296   : > { %v995_v43 = vadd.f32 %v1358_v35, %v994_v41 }
 0x297   : > { %1026 = vst [vmem:[%s1554_s30 + $0x60] sm:$0xff] %v1005_v42  ;;  %v984_v44 = vpop.f32.mrf.mxu1 }
 0x298   : > { %1022 = vst [vmem:[%s1554_s30 + $0x40] sm:$0xff] %v995_v43  ;;  %v985_v45 = vadd.f32 %v1358_v35, %v984_v44 }
 0x29a   : > { %1018 = vst [vmem:[%s1554_s30 + $0x20] sm:$0xff] %v985_v45 }
 0x29c   : > { %v1006_v46 = vpop.f32.mrf.mxu3 }
 0x29d   : > { %v996_v47 = vpop.f32.mrf.mxu2  ;;  %v1007_v48 = vadd.f32 %v1358_v35, %v1006_v46 }
 0x29e   : > { %v997_v49 = vadd.f32 %v1358_v35, %v996_v47 }
 0x29f   : > { %1027 = vst [vmem:[%s1554_s30 + $0x68] sm:$0xff] %v1007_v48  ;;  %v986_v50 = vpop.f32.mrf.mxu1 }
 0x2a0   : > { %1023 = vst [vmem:[%s1554_s30 + $0x48] sm:$0xff] %v997_v49  ;;  %v987_v51 = vadd.f32 %v1358_v35, %v986_v50 }
 0x2a2   : > { %1019 = vst [vmem:[%s1554_s30 + $0x28] sm:$0xff] %v987_v51 }
 0x2a4   : > { %v1009_v52 = vpop.f32.mrf.mxu3 }
 0x2a5   : > { %v999_v53 = vpop.f32.mrf.mxu2  ;;  %v1010_v54 = vadd.f32 %v1358_v35, %v1009_v52 }
 0x2a6   : > { %v1000_v55 = vadd.f32 %v1358_v35, %v999_v53 }
 0x2a7   : > { %1028 = vst [vmem:[%s1554_s30 + $0x70] sm:$0xff] %v1010_v54  ;;  %v979_v56 = vpop.f32.mrf.mxu0 }
 0x2a8   : > { %1024 = vst [vmem:[%s1554_s30 + $0x50] sm:$0xff] %v1000_v55  ;;  %v980_v57 = vadd.f32 %v1358_v35, %v979_v56 }
 0x2aa   : > { %1016 = vst [vmem:[%s1554_s30 + $0x10] sm:$0xff] %v980_v57 }
 0x2ac   : > { %v1011_v58 = vpop.f32.mrf.mxu3 }
 0x2ad   : > { %v1001_v59 = vpop.f32.mrf.mxu2  ;;  %v1012_v60 = vadd.f32 %v1358_v35, %v1011_v58 }
 0x2ae   : > { %v1002_v61 = vadd.f32 %v1358_v35, %v1001_v59 }
 0x2af   : > { %1029 = vst [vmem:[%s1554_s30 + $0x78] sm:$0xff] %v1012_v60  ;;  %v981_v62 = vpop.f32.mrf.mxu0  ;;  %v989_v63 = vpop.f32.mrf.mxu1 }
 0x2b0   : > { %1025 = vst [vmem:[%s1554_s30 + $0x58] sm:$0xff] %v1002_v61  ;;  %v982_v0 = vadd.f32 %v1358_v35, %v981_v62  ;;  %v990_v1 = vadd.f32 %v1358_v35, %v989_v63 }
 0x2b2   : > { %1017 = vst [vmem:[%s1554_s30 + $0x18] sm:$0xff] %v982_v0 }
 0x2b3   : > { %1020 = vst [vmem:[%s1554_s30 + $0x30] sm:$0xff] %v990_v1 }
 0x2b7   : > { %v991_v2 = vpop.f32.mrf.mxu1 }
 0x2b8   : > { %v992_v3 = vadd.f32 %v1358_v35, %v991_v2 }
 0x2ba   : > { %1021 = vst [vmem:[%s1554_s30 + $0x38] sm:$0xff] %v992_v3 }
 0x2bb PF: > { %s16_s27 = sadd.s32 1, %s1413_s27   ;;  %s1687_s21 = smov %s1393_s22 }
 0x2bc   : > { %p13_p0 = scmp.ge.s32.totalorder %s16_s27, 11   ;;  %s1688_s22 = smov %s1504_s10 }
 0x2bd   : > { %s1689_s23 = smov %s1405_s25  ;;  %s1690_s24 = smov %s1409_s26 }
 0x2be   : > { %s1691_s25 = smov %s1694_s28  ;;  %s1692_s26 = smov %s1698_s29 }
 0x2bf   :  { %15 = sbr.rel (!%p13_p0) target bundleno = 4 (0x4), region = 137 }

// kernel: gcn_forward.3
= control target key start
LH: loop header
LB: loop body
LE: loop exit
PB: predicated region body
PF: predicated region fallthrough
CT: control target
= control target key end

     0   :  { %s1469_s21 = smov 0   ;;  %s1471_s22 = smov 0   ;;  %s1696_s0 = inlined_call_operand.vmem [shape: bf16[384,384], index: 0, kind: input, shape index: {}]   ;;  %s1697_s1 = inlined_call_operand.vmem [shape: f32[384,1], index: 1, kind: input, shape index: {}, may-alias: {1,3}]   ;;  %s1698_s2 = inlined_call_operand.vmem [shape: f32[384,128], index: 2, kind: input, shape index: {}]   ;;  %s1699_s3 = inlined_call_operand.vmem [shape: f32[384,1], index: 3, kind: input, shape index: {}, may-alias: {1,3}]   ;;  %s1700_s4 = inlined_call_operand.vmem [shape: bf16[128,128], index: 4, kind: input, shape index: {}]   ;;  %s1701_s5 = inlined_call_operand.vmem [shape: f32[1,128], index: 5, kind: input, shape index: {}]   ;;  %s1702_s6 = inlined_call_operand.vmem [shape: f32[384,128], index: 6, kind: output, shape index: {}]  }
   0x1   :  { %s1473_s23 = smov 0   ;;  %s1475_s24 = smov 0  }
   0x2   :  { %s1477_s25 = smov 0   ;;  %s1479_s26 = smov 0  }
   0x3   :  { %s1481_s27 = smov 0  }
   0x4 LB: > { %s25_s28 = sadd.s32 1, %s1421_s25  ;;  %s28_s29 = sadd.s32 1, %s1425_s26  ;;  %s1429_s27 = sphi %s1481_s27, %s16_s27   ;;  %s1425_s26 = sphi %s1479_s26, %s1708_s26   ;;  %s1421_s25 = sphi %s1477_s25, %s1707_s25   ;;  %s1417_s24 = sphi %s1475_s24, %s1706_s24   ;;  %s1413_s23 = sphi %s1473_s23, %s1705_s23   ;;  %s1409_s22 = sphi %s1471_s22, %s1704_s22   ;;  %s1405_s21 = sphi %s1469_s21, %s1703_s21  }
   0x5   : > { %p26_p0 = scmp.ge.s32.totalorder %s25_s28, 3  ;;  %p44_p1 = scmp.ne.s32.totalorder %s1409_s22, %s1405_s21 }
   0x6   : > { %p45_p2 = scmp.eq.s32.totalorder %s1429_s27, 0  ;;  %s37_s9 = sadd.s32 1, %s1409_s22 }
   0x7   : > { %s1710_s28 = smov (%p26_p0, %s25_s28), 0  ;;  %s1712_s29 = smov (!%p26_p0, %s28_s29), %s1425_s26 }
   0x8   : > { %p46_p3 = por %p45_p2, %p44_p1  ;;  %p30_p4 = scmp.ge.s32.totalorder %s1712_s29, 3 }
   0x9   : > { %s33_s30 = ssub.s32 %s1421_s25, %s1710_s28  ;;  %p1161_p6 = scmp.ge.s32.totalorder %s1429_s27, 9 }
   0xa   : > { %s1714_s29 = smov (%p30_p4, %s1712_s29), 0 }
   0xb   : > { %s32_s7 = ssub.s32 %s1425_s26, %s1714_s29  ;;  %222 = sbr.rel (%p1161_p6) target bundleno = 39 (0x27), region = 24 }
   0xc   : > { %s34_s8 = sor.u32 %s33_s30, %s32_s7 }
   0xd   : > { %p35_p5 = scmp.eq.s32.totalorder %s34_s8, 0 }
   0xf   : > { %s1520_s10 = scalar_select %p35_p5, %s1409_s22, %s37_s9  }
  0x10   : > { %225 = sbr.rel (!%p46_p3) target bundleno = 39 (0x27), region = 28  ;;  %s227_s11 = sand.u32 (%p46_p3), 1, %s1409_s22  }
  0x11   : > { %s1308_s12 = smul.u32 (%p46_p3), 48, %s1425_s26  ;;  %s1162_s13 = sshll.u32 (%p46_p3), %s227_s11, 6 }
  0x12   : > { %s229_s19 = scalar_lea.vmem (%p46_p3), [#allocation3], %s1162_s13 }
  0x13   : > { %s232_s14 = sadd.s32 (%p46_p3), %s1421_s25, %s1308_s12 }
  0x14   : > { %s1165_s15 = sshll.u32 (%p46_p3), %s232_s14, 2 }
  0x15   : > { %s1529_s18 = scalar_lea.vmem %s1696_s0, %s1165_s15 }
  0x16   : > { %v251_v0 = vld [vmem:[%s1529_s18] sm:$0xf]  ;;  %v253_v1 = vld [vmem:[%s1529_s18 + $0xc] sm:$0xf]  ;;  %v255_v2 = vld [vmem:[%s1529_s18 + $0x18] sm:$0xf] }
  0x17   : > { %252 = vst [vmem:[%s229_s19] sm:$0xf] %v251_v0  ;;  %v257_v3 = vld [vmem:[%s1529_s18 + $0x24] sm:$0xf]  ;;  %v259_v4 = vld [vmem:[%s1529_s18 + $0x30] sm:$0xf] }
  0x18   : > { %254 = vst [vmem:[%s229_s19 + $0x4] sm:$0xf] %v253_v1  ;;  %v261_v5 = vld [vmem:[%s1529_s18 + $0x3c] sm:$0xf]  ;;  %v263_v6 = vld [vmem:[%s1529_s18 + $0x48] sm:$0xf] }
  0x19   : > { %256 = vst [vmem:[%s229_s19 + $0x8] sm:$0xf] %v255_v2  ;;  %v265_v7 = vld [vmem:[%s1529_s18 + $0x54] sm:$0xf]  ;;  %v267_v8 = vld [vmem:[%s1529_s18 + $0x60] sm:$0xf] }
  0x1a   : > { %258 = vst [vmem:[%s229_s19 + $0xc] sm:$0xf] %v257_v3  ;;  %v269_v9 = vld [vmem:[%s1529_s18 + $0x6c] sm:$0xf]  ;;  %v271_v10 = vld [vmem:[%s1529_s18 + $0x78] sm:$0xf] }
  0x1b   : > { %260 = vst [vmem:[%s229_s19 + $0x10] sm:$0xf] %v259_v4  ;;  %v273_v11 = vld [vmem:[%s1529_s18 + $0x84] sm:$0xf]  ;;  %v275_v12 = vld [vmem:[%s1529_s18 + $0x90] sm:$0xf] }
  0x1c   : > { %262 = vst [vmem:[%s229_s19 + $0x14] sm:$0xf] %v261_v5  ;;  %v277_v13 = vld [vmem:[%s1529_s18 + $0x9c] sm:$0xf]  ;;  %v279_v14 = vld [vmem:[%s1529_s18 + $0xa8] sm:$0xf] }
  0x1d   : > { %264 = vst [vmem:[%s229_s19 + $0x18] sm:$0xf] %v263_v6  ;;  %v281_v15 = vld [vmem:[%s1529_s18 + $0xb4] sm:$0xf] }
  0x1e   : > { %266 = vst [vmem:[%s229_s19 + $0x1c] sm:$0xf] %v265_v7 }
  0x1f   : > { %268 = vst [vmem:[%s229_s19 + $0x20] sm:$0xf] %v267_v8 }
  0x20   : > { %270 = vst [vmem:[%s229_s19 + $0x24] sm:$0xf] %v269_v9 }
  0x21   : > { %272 = vst [vmem:[%s229_s19 + $0x28] sm:$0xf] %v271_v10 }
  0x22   : > { %274 = vst [vmem:[%s229_s19 + $0x2c] sm:$0xf] %v273_v11 }
  0x23   : > { %276 = vst [vmem:[%s229_s19 + $0x30] sm:$0xf] %v275_v12 }
  0x24   : > { %278 = vst [vmem:[%s229_s19 + $0x34] sm:$0xf] %v277_v13 }
  0x25   : > { %280 = vst [vmem:[%s229_s19 + $0x38] sm:$0xf] %v279_v14 }
  0x26   : > { %282 = vst [vmem:[%s229_s19 + $0x3c] sm:$0xf] %v281_v15 }
  0x27 PF: > { %p1166_p7 = scmp.ge.s32.totalorder %s1429_s27, 1  ;;  %p364_p8 = scmp.lt.s32.totalorder %s1429_s27, 10 }
  0x29   : > { %p365_p9 = pnand %p1166_p7, %p364_p8 }
  0x2a   : > { %s371_s20 = sand.u32 (!%p365_p9), 1, %s1405_s21   ;;  %s1168_s30 = sshll.u32 (!%p365_p9), %s1413_s23, 4 }
  0x2b   : > { %368 = sbr.rel (%p365_p9) target bundleno = 701 (0x2bd), region = 81  ;;  %s1167_s7 = sshll.u32 (!%p365_p9), %s371_s20, 6 }
  0x2c   : > { %p417_p10 = scmp.lt.s32.totalorder (!%p365_p9), %s1168_s30, 47  ;;  %s1172_s8 = sshll.u32 (!%p365_p9), %s1417_s24, 4 }
  0x2d   : > { %p429_p11 = scmp.lt.s32.totalorder (!%p365_p9), %s1172_s8, 47  ;;  %s1572_s11 = scalar_lea.vmem (!%p365_p9), [#allocation3], %s1167_s7 }
  0x2e   : > { %p1176_p12 = scmp.ne.s32.totalorder (!%p365_p9), %s1413_s23, 0 }
  0x30   : > { %s1716_s30 = smov (!%p417_p10, %s1168_s30), 47  ;;  %s1718_s8 = smov (!%p429_p11, %s1172_s8), 47 }
  0x31   : > { %s1169_s9 = sshll.u32 %s1716_s30, 3  ;;  %s1173_s17 = sshll.u32 %s1718_s8, 3 }
  0x32   : > { %s1555_s13 = scalar_lea.vmem %s1697_s1, %s1169_s9  ;;  %s1560_s16 = scalar_lea.vmem %s1698_s2, %s1169_s9 }
  0x33   : > { %s1565_s19 = scalar_lea.vmem %s1699_s3, %s1173_s17  ;;  %s1570_s30 = scalar_lea.vmem %s1702_s6, %s1173_s17 }
  0x34   : > { %443 = sbr.rel (%p1176_p12) target bundleno = 74 (0x4a), region = 89 }
  0x39   : > { %v1431_v16 = vmov 0.0  }
  0x3a   : > { %444 = vst [vmem:[#allocation2 + $0x30] sm:$0xff] %v1431_v16 }
  0x3b   : > { %445 = vst [vmem:[#allocation2] sm:$0xff] %v1431_v16 }
  0x3c   : > { %446 = vst [vmem:[#allocation2 + $0x58] sm:$0xff] %v1431_v16 }
  0x3d   : > { %447 = vst [vmem:[#allocation2 + $0x18] sm:$0xff] %v1431_v16 }
  0x3e   : > { %448 = vst [vmem:[#allocation2 + $0x50] sm:$0xff] %v1431_v16 }
  0x3f   : > { %449 = vst [vmem:[#allocation2 + $0x68] sm:$0xff] %v1431_v16 }
  0x40   : > { %450 = vst [vmem:[#allocation2 + $0x8] sm:$0xff] %v1431_v16 }
  0x41   : > { %451 = vst [vmem:[#allocation2 + $0x48] sm:$0xff] %v1431_v16 }
  0x42   : > { %452 = vst [vmem:[#allocation2 + $0x40] sm:$0xff] %v1431_v16 }
  0x43   : > { %453 = vst [vmem:[#allocation2 + $0x20] sm:$0xff] %v1431_v16 }
  0x44   : > { %454 = vst [vmem:[#allocation2 + $0x10] sm:$0xff] %v1431_v16 }
  0x45   : > { %455 = vst [vmem:[#allocation2 + $0x38] sm:$0xff] %v1431_v16 }
  0x46   : > { %456 = vst [vmem:[#allocation2 + $0x60] sm:$0xff] %v1431_v16 }
  0x47   : > { %457 = vst [vmem:[#allocation2 + $0x70] sm:$0xff] %v1431_v16 }
  0x48   : > { %458 = vst [vmem:[#allocation2 + $0x78] sm:$0xff] %v1431_v16 }
  0x49   : > { %459 = vst [vmem:[#allocation2 + $0x28] sm:$0xff] %v1431_v16 }
  0x4a PF: > { %v490_v17 = vld [vmem:[%s1555_s13 + $0x70] sm:$0xff]  ;;  %v488_v18 = vld [vmem:[%s1555_s13 + $0x60] sm:$0xff]  ;;  %v1432_v20 = vmov 0   ;;  %v489_v21 = vld [vmem:[%s1555_s13 + $0x68] sm:$0xff]  ;;  %p1209_p13 = scmp.ne.s32.totalorder %s1413_s23, 2 }
  0x4b   : > { %v486_v19 = vld [vmem:[%s1555_s13 + $0x50] sm:$0xff]  ;;  %1370 = vset.pattern.permute.xlu2 %v1432_v20  ;;  %1369 = vset.pattern.permute.xlu1 %v1432_v20  ;;  %v491_v22 = vld [vmem:[%s1555_s13 + $0x78] sm:$0xff]  ;;  %v485_v24 = vld [vmem:[%s1555_s13 + $0x48] sm:$0xff] }
  0x4c   : > { %1368 = vset.pattern.permute.xlu0 %v1432_v20  ;;  %554 = vperm.xlu1 %1369, %v488_v18   ;;  %v487_v23 = vld [vmem:[%s1555_s13 + $0x58] sm:$0xff]  ;;  %v484_v25 = vld [vmem:[%s1555_s13 + $0x40] sm:$0xff]  ;;  %v482_v26 = vld [vmem:[%s1555_s13 + $0x30] sm:$0xff] }
  0x4d   : > { %564 = vperm.xlu0 %1368, %v490_v17   ;;  %544 = vperm.xlu2 %1370, %v486_v19   ;;  %v480_v27 = vld [vmem:[%s1555_s13 + $0x20] sm:$0xff]  ;;  %v483_v28 = vld [vmem:[%s1555_s13 + $0x38] sm:$0xff]  ;;  %v481_v29 = vld [vmem:[%s1555_s13 + $0x28] sm:$0xff] }
  0x4e   : > { %v479_v30 = vld [vmem:[%s1555_s13 + $0x18] sm:$0xff]  ;;  %v478_v31 = vld [vmem:[%s1555_s13 + $0x10] sm:$0xff]  ;;  %v476_v32 = vld [vmem:[%s1555_s13] sm:$0xff] }
  0x4f   : > { %v477_v33 = vld [vmem:[%s1555_s13 + $0x8] sm:$0xff]  ;;  %v474_v37 = vld [vmem:[%s1560_s16 + $0x70] sm:$0xff]  ;;  %v475_v38 = vld [vmem:[%s1560_s16 + $0x78] sm:$0xff] }
  0x50   : > { %v473_v42 = vld [vmem:[%s1560_s16 + $0x68] sm:$0xff]  ;;  %v472_v45 = vld [vmem:[%s1560_s16 + $0x60] sm:$0xff]  ;;  %v470_v48 = vld [vmem:[%s1560_s16 + $0x50] sm:$0xff] }
  0x51   : > { %v471_v49 = vld [vmem:[%s1560_s16 + $0x58] sm:$0xff]  ;;  %v469_v55 = vld [vmem:[%s1560_s16 + $0x48] sm:$0xff]  ;;  %v468_v57 = vld [vmem:[%s1560_s16 + $0x40] sm:$0xff] }
  0x52   : > { %v466_v62 = vld [vmem:[%s1560_s16 + $0x30] sm:$0xff]  ;;  %v467_v63 = vld [vmem:[%s1560_s16 + $0x38] sm:$0xff]  ;;  %v464_v3 = vld [vmem:[%s1560_s16 + $0x20] sm:$0xff] }
  0x53   : > { %v465_v6 = vld [vmem:[%s1560_s16 + $0x28] sm:$0xff]  ;;  %v463_v11 = vld [vmem:[%s1560_s16 + $0x18] sm:$0xff]  ;;  %v462_v12 = vld [vmem:[%s1560_s16 + $0x10] sm:$0xff] }
  0x54   : > { %559 = vperm.xlu1 %1369, %v489_v21   ;;  %v460_v20 = vld [vmem:[%s1560_s16] sm:$0xff]  ;;  %v461_v21 = vld [vmem:[%s1560_s16 + $0x8] sm:$0xff] }
  0x55   : > { %569 = vperm.xlu0 %1368, %v491_v22   ;;  %549 = vperm.xlu2 %1370, %v487_v23  }
  0x5c   : > { %539 = vperm.xlu1 %1369, %v485_v24  }
  0x5d   : > { %534 = vperm.xlu0 %1368, %v484_v25   ;;  %524 = vperm.xlu2 %1370, %v482_v26   ;;  %v1244_v26 = vld [vmem:[%s1572_s11] sm:$0xff] }
  0x64   : > { %514 = vperm.xlu1 %1369, %v480_v27   ;;  %v1246_v27 = vld [vmem:[%s1572_s11 + $0x10] sm:$0xff] }
  0x65   : > { %529 = vperm.xlu0 %1368, %v483_v28   ;;  %519 = vperm.xlu2 %1370, %v481_v29   ;;  %v1248_v28 = vld [vmem:[%s1572_s11 + $0x20] sm:$0xff]  ;;  %v1250_v29 = vld [vmem:[%s1572_s11 + $0x30] sm:$0xff] }
  0x6c   : > { %509 = vperm.xlu1 %1369, %v479_v30   ;;  %v1245_v30 = vld [vmem:[%s1572_s11 + $0x8] sm:$0xff] }
  0x6d   : > { %504 = vperm.xlu0 %1368, %v478_v31   ;;  %494 = vperm.xlu2 %1370, %v476_v32   ;;  %v1247_v31 = vld [vmem:[%s1572_s11 + $0x18] sm:$0xff]  ;;  %v1249_v32 = vld [vmem:[%s1572_s11 + $0x28] sm:$0xff] }
  0x75   : > { %499 = vperm.xlu0 %1368, %v477_v33   ;;  %v1251_v33 = vld [vmem:[%s1572_s11 + $0x38] sm:$0xff] }
  0xa7   : > { %v545_v34 = vpop.permute.xlu2 %544 }
  0xa8   : > { %v582_v51 = vmul.f32 %v545_v34, %v470_v48  ;;  %v596_v34 = vld [vmem:[#allocation2 + $0x30] sm:$0xff] }
  0xaf   : > { %v550_v40 = vpop.permute.xlu2 %549 }
  0xb0   : > { %v583_v52 = vmul.f32 %v550_v40, %v471_v49  ;;  %v604_v40 = vld [vmem:[#allocation2 + $0x40] sm:$0xff] }
  0xb2   : > { %v593_v59 = vpack.c.bf16 %v583_v52, %v582_v51  ;;  %v605_v52 = vld [vmem:[#allocation2 + $0x20] sm:$0xff] }
  0xb7   : > { %v525_v58 = vpop.permute.xlu2 %524 }
  0xb8   : > { %v578_v4 = vmul.f32 %v525_v58, %v466_v62 }
  0xbe   : > { %v555_v35 = vpop.permute.xlu1 %554 }
  0xbf   : > { %v565_v36 = vpop.permute.xlu0 %564  ;;  %v584_v50 = vmul.f32 %v555_v35, %v472_v45  ;;  %v520_v9 = vpop.permute.xlu2 %519  ;;  %v600_v35 = vld [vmem:[#allocation2 + $0x50] sm:$0xff] }
  0xc0   : > { %v586_v43 = vmul.f32 %v565_v36, %v474_v37  ;;  %v577_v10 = vmul.f32 %v520_v9, %v465_v6 }
  0xc6   : > { %v560_v39 = vpop.permute.xlu1 %559 }
  0xc7   : > { %v570_v41 = vpop.permute.xlu0 %569  ;;  %v585_v47 = vmul.f32 %v560_v39, %v473_v42  ;;  %v495_v19 = vpop.permute.xlu2 %494  ;;  %v597_v42 = vld [vmem:[#allocation2] sm:$0xff] }
  0xc8   : > { %v587_v44 = vmul.f32 %v570_v41, %v475_v38  ;;  %v572_v23 = vmul.f32 %v495_v19, %v460_v20  ;;  %v608_v41 = vld [vmem:[#allocation2 + $0x60] sm:$0xff] }
  0xc9   : > { %v594_v53 = vpack.c.bf16 %v585_v47, %v584_v50 }
  0xca   : > { %v595_v46 = vpack.c.bf16 %v587_v44, %v586_v43  ;;  %v601_v43 = vld [vmem:[#allocation2 + $0x68] sm:$0xff] }
  0xcc   : > { %676 = vmatpush.bf16.msra.mxu0 %v595_v46  ;;  %1260 = vmatpush.bf16.msra.mxu1 %v595_v46 }
  0xcd   : > { %1261 = vmatpush.bf16.msra.mxu2 %v595_v46  ;;  %1262 = vmatpush.bf16.msra.mxu3 %v595_v46 }
  0xce   : > { %v540_v54 = vpop.permute.xlu1 %539 }
  0xcf   : > { %v535_v56 = vpop.permute.xlu0 %534  ;;  %v581_v60 = vmul.f32 %v540_v54, %v469_v55  ;;  %v598_v54 = vld [vmem:[#allocation2 + $0x58] sm:$0xff]  ;;  %v602_v55 = vld [vmem:[#allocation2 + $0x8] sm:$0xff] }
  0xd0   : > { %677 = vmatpush.bf16.msra.mxu0 %v594_v53  ;;  %1263 = vmatpush.bf16.msra.mxu1 %v594_v53  ;;  %v580_v61 = vmul.f32 %v535_v56, %v468_v57 }
  0xd1   : > { %1264 = vmatpush.bf16.msra.mxu2 %v594_v53  ;;  %1265 = vmatpush.bf16.msra.mxu3 %v594_v53  ;;  %v609_v53 = vld [vmem:[#allocation2 + $0x70] sm:$0xff] }
  0xd2   : > { %v592_v0 = vpack.c.bf16 %v581_v60, %v580_v61 }
  0xd4   : > { %678 = vmatpush.bf16.msra.mxu0 %v593_v59  ;;  %1266 = vmatpush.bf16.msra.mxu1 %v593_v59 }
  0xd5   : > { %1267 = vmatpush.bf16.msra.mxu2 %v593_v59  ;;  %1268 = vmatpush.bf16.msra.mxu3 %v593_v59 }
  0xd6   : > { %v515_v1 = vpop.permute.xlu1 %514 }
  0xd7   : > { %v530_v2 = vpop.permute.xlu0 %529  ;;  %v576_v8 = vmul.f32 %v515_v1, %v464_v3  ;;  %v610_v1 = vld [vmem:[#allocation2 + $0x78] sm:$0xff]  ;;  %v603_v3 = vld [vmem:[#allocation2 + $0x48] sm:$0xff] }
  0xd8   : > { %v579_v5 = vmul.f32 %v530_v2, %v467_v63  ;;  %679 = vmatpush.bf16.msra.mxu0 %v592_v0  ;;  %1269 = vmatpush.bf16.msra.mxu1 %v592_v0  ;;  %v599_v2 = vld [vmem:[#allocation2 + $0x18] sm:$0xff] }
  0xd9   : > { %1270 = vmatpush.bf16.msra.mxu2 %v592_v0  ;;  %1271 = vmatpush.bf16.msra.mxu3 %v592_v0  ;;  %v590_v13 = vpack.c.bf16 %v577_v10, %v576_v8  ;;  %v606_v0 = vld [vmem:[#allocation2 + $0x10] sm:$0xff] }
  0xda   : > { %v591_v7 = vpack.c.bf16 %v579_v5, %v578_v4 }
  0xdc   : > { %680 = vmatpush.bf16.msra.mxu0 %v591_v7  ;;  %1272 = vmatpush.bf16.msra.mxu1 %v591_v7 }
  0xdd   : > { %1273 = vmatpush.bf16.msra.mxu2 %v591_v7  ;;  %1274 = vmatpush.bf16.msra.mxu3 %v591_v7 }
  0xde   : > { %v510_v14 = vpop.permute.xlu1 %509 }
  0xdf   : > { %v575_v15 = vmul.f32 %v510_v14, %v463_v11  ;;  %v505_v16 = vpop.permute.xlu0 %504 }
  0xe0   : > { %v574_v17 = vmul.f32 %v505_v16, %v462_v12  ;;  %681 = vmatpush.bf16.msra.mxu0 %v590_v13  ;;  %1275 = vmatpush.bf16.msra.mxu1 %v590_v13  ;;  %v607_v12 = vld [vmem:[#allocation2 + $0x38] sm:$0xff] }
  0xe1   : > { %1276 = vmatpush.bf16.msra.mxu2 %v590_v13  ;;  %1277 = vmatpush.bf16.msra.mxu3 %v590_v13  ;;  %v611_v13 = vld [vmem:[#allocation2 + $0x28] sm:$0xff] }
  0xe2   : > { %v589_v18 = vpack.c.bf16 %v575_v15, %v574_v17 }
  0xe4   : > { %682 = vmatpush.bf16.msra.mxu0 %v589_v18  ;;  %1278 = vmatpush.bf16.msra.mxu1 %v589_v18 }
  0xe5   : > { %1279 = vmatpush.bf16.msra.mxu2 %v589_v18  ;;  %1280 = vmatpush.bf16.msra.mxu3 %v589_v18 }
  0xe7   : > { %v500_v22 = vpop.permute.xlu0 %499 }
  0xe8   : > { %v573_v24 = vmul.f32 %v500_v22, %v461_v21 }
  0xea   : > { %v588_v25 = vpack.c.bf16 %v573_v24, %v572_v23 }
  0xec   : > { %683 = vmatpush.bf16.msra.mxu0 %v588_v25  ;;  %1281 = vmatpush.bf16.msra.mxu1 %v588_v25 }
  0xed   : > { %1282 = vmatpush.bf16.msra.mxu2 %v588_v25  ;;  %1283 = vmatpush.bf16.msra.mxu3 %v588_v25 }
  0xef   : > { %684 = vmatmul.bf16.vlgmr.msra.gmra.mxu0 %v1244_v26  ;;  %694 = vmatmul.bf16.vlgmr.msra.gmra.mxu1 %v1246_v27 }
  0xf0   : > { %704 = vmatmul.bf16.vlgmr.msra.gmra.mxu2 %v1248_v28  ;;  %714 = vmatmul.bf16.vlgmr.msra.gmra.mxu3 %v1250_v29 }
  0xff   : > { %689 = vmatmul.bf16.gmra.mxu0 %v1245_v30  ;;  %699 = vmatmul.bf16.gmra.mxu1 %v1247_v31 }
 0x100   : > { %709 = vmatmul.bf16.gmra.mxu2 %v1249_v32  ;;  %719 = vmatmul.bf16.gmra.mxu3 %v1251_v33 }
 0x16c   : > { %v685_v36 = vpop.f32.mrf.mxu0  ;;  %v695_v37 = vpop.f32.mrf.mxu1 }
 0x16d   : > { %v725_v38 = vadd.f32 %v685_v36, %v596_v34  ;;  %v729_v39 = vadd.f32 %v695_v37, %v600_v35 }
 0x16f   : > { %741 = vst [vmem:[#allocation2 + $0x30] sm:$0xff] %v725_v38 }
 0x170   : > { %745 = vst [vmem:[#allocation2 + $0x50] sm:$0xff] %v729_v39 }
 0x173   : > { %v705_v44 = vpop.f32.mrf.mxu2  ;;  %v715_v45 = vpop.f32.mrf.mxu3 }
 0x174   : > { %v733_v46 = vadd.f32 %v705_v44, %v604_v40  ;;  %v737_v47 = vadd.f32 %v715_v45, %v608_v41  ;;  %v687_v48 = vpop.f32.mrf.mxu0  ;;  %v697_v49 = vpop.f32.mrf.mxu1 }
 0x175   : > { %v726_v50 = vadd.f32 %v687_v48, %v597_v42  ;;  %v730_v51 = vadd.f32 %v697_v49, %v601_v43 }
 0x176   : > { %749 = vst [vmem:[#allocation2 + $0x40] sm:$0xff] %v733_v46 }
 0x177   : > { %753 = vst [vmem:[#allocation2 + $0x60] sm:$0xff] %v737_v47 }
 0x178   : > { %742 = vst [vmem:[#allocation2] sm:$0xff] %v726_v50 }
 0x179   : > { %746 = vst [vmem:[#allocation2 + $0x68] sm:$0xff] %v730_v51 }
 0x17b   : > { %v707_v56 = vpop.f32.mrf.mxu2  ;;  %v717_v57 = vpop.f32.mrf.mxu3 }
 0x17c   : > { %v734_v58 = vadd.f32 %v707_v56, %v605_v52  ;;  %v738_v59 = vadd.f32 %v717_v57, %v609_v53  ;;  %v690_v60 = vpop.f32.mrf.mxu0  ;;  %v700_v61 = vpop.f32.mrf.mxu1 }
 0x17d   : > { %v727_v62 = vadd.f32 %v690_v60, %v598_v54  ;;  %v731_v63 = vadd.f32 %v700_v61, %v602_v55 }
 0x17e   : > { %750 = vst [vmem:[#allocation2 + $0x20] sm:$0xff] %v734_v58 }
 0x17f   : > { %754 = vst [vmem:[#allocation2 + $0x70] sm:$0xff] %v738_v59 }
 0x180   : > { %743 = vst [vmem:[#allocation2 + $0x58] sm:$0xff] %v727_v62 }
 0x181   : > { %747 = vst [vmem:[#allocation2 + $0x8] sm:$0xff] %v731_v63 }
 0x183   : > { %v710_v4 = vpop.f32.mrf.mxu2  ;;  %v720_v5 = vpop.f32.mrf.mxu3 }
 0x184   : > { %v735_v6 = vadd.f32 %v710_v4, %v606_v0  ;;  %v739_v7 = vadd.f32 %v720_v5, %v610_v1  ;;  %v692_v8 = vpop.f32.mrf.mxu0  ;;  %v702_v9 = vpop.f32.mrf.mxu1 }
 0x185   : > { %v728_v10 = vadd.f32 %v692_v8, %v599_v2  ;;  %v732_v11 = vadd.f32 %v702_v9, %v603_v3 }
 0x186   : > { %751 = vst [vmem:[#allocation2 + $0x10] sm:$0xff] %v735_v6 }
 0x187   : > { %755 = vst [vmem:[#allocation2 + $0x78] sm:$0xff] %v739_v7 }
 0x188   : > { %744 = vst [vmem:[#allocation2 + $0x18] sm:$0xff] %v728_v10 }
 0x189   : > { %748 = vst [vmem:[#allocation2 + $0x48] sm:$0xff] %v732_v11 }
 0x18b   : > { %v712_v14 = vpop.f32.mrf.mxu2  ;;  %v722_v15 = vpop.f32.mrf.mxu3  ;;  %760 = sbr.rel (%p1209_p13) target bundleno = 701 (0x2bd), region = 93 }
 0x18c   : > { %v736_v16 = vadd.f32 %v712_v14, %v607_v12  ;;  %v740_v17 = vadd.f32 %v722_v15, %v611_v13 }
 0x18e   : > { %752 = vst [vmem:[#allocation2 + $0x38] sm:$0xff] %v736_v16 }
 0x18f   : > { %756 = vst [vmem:[#allocation2 + $0x28] sm:$0xff] %v740_v17 }
 0x190   : > { %v789_v18 = vld [vmem:[%s1565_s19 + $0x60] sm:$0xff]  ;;  %v1433_v21 = vmov 0   ;;  %v790_v22 = vld [vmem:[%s1565_s19 + $0x68] sm:$0xff]  ;;  %v1259_v25 = vld [vmem:[%s1700_s4 + $0x38] sm:$0xff] }
 0x191   : > { %v785_v19 = vld [vmem:[%s1565_s19 + $0x40] sm:$0xff]  ;;  %1373 = vset.pattern.permute.xlu2 %v1433_v21  ;;  %1372 = vset.pattern.permute.xlu1 %v1433_v21  ;;  %v786_v23 = vld [vmem:[%s1565_s19 + $0x48] sm:$0xff]  ;;  %v787_v28 = vld [vmem:[%s1565_s19 + $0x50] sm:$0xff] }
 0x192   : > { %v777_v20 = vld [vmem:[%s1565_s19] sm:$0xff]  ;;  %1371 = vset.pattern.permute.xlu0 %v1433_v21  ;;  %855 = vperm.xlu1 %1372, %v789_v18   ;;  %v778_v24 = vld [vmem:[%s1565_s19 + $0x8] sm:$0xff]  ;;  %v791_v29 = vld [vmem:[%s1565_s19 + $0x70] sm:$0xff] }
 0x193   : > { %835 = vperm.xlu0 %1371, %v785_v19   ;;  %795 = vperm.xlu2 %1373, %v777_v20   ;;  %v782_v26 = vld [vmem:[%s1565_s19 + $0x28] sm:$0xff]  ;;  %v781_v27 = vld [vmem:[%s1565_s19 + $0x20] sm:$0xff]  ;;  %v788_v30 = vld [vmem:[%s1565_s19 + $0x58] sm:$0xff] }
 0x194   : > { %965 = vmatpush.bf16.msra.mxu0 %v1259_v25  ;;  %1285 = vmatpush.bf16.msra.mxu2 %v1259_v25  ;;  %v792_v31 = vld [vmem:[%s1565_s19 + $0x78] sm:$0xff]  ;;  %v779_v33 = vld [vmem:[%s1565_s19 + $0x10] sm:$0xff]  ;;  %v1257_v37 = vld [vmem:[%s1700_s4 + $0x28] sm:$0xff] }
 0x195   : > { %1286 = vmatpush.bf16.msra.mxu3 %v1259_v25  ;;  %1284 = vmatpush.bf16.msra.mxu1 %v1259_v25  ;;  %v780_v32 = vld [vmem:[%s1565_s19 + $0x18] sm:$0xff]  ;;  %v783_v34 = vld [vmem:[%s1565_s19 + $0x30] sm:$0xff]  ;;  %v1256_v38 = vld [vmem:[%s1700_s4 + $0x20] sm:$0xff] }
 0x196   : > { %v784_v35 = vld [vmem:[%s1565_s19 + $0x38] sm:$0xff]  ;;  %v1258_v36 = vld [vmem:[%s1700_s4 + $0x30] sm:$0xff]  ;;  %v1253_v41 = vld [vmem:[%s1700_s4 + $0x8] sm:$0xff] }
 0x197   : > { %v1255_v39 = vld [vmem:[%s1700_s4 + $0x18] sm:$0xff]  ;;  %v1254_v40 = vld [vmem:[%s1700_s4 + $0x10] sm:$0xff]  ;;  %v1252_v42 = vld [vmem:[%s1700_s4] sm:$0xff] }
 0x198   : > { %966 = vmatpush.bf16.msra.mxu0 %v1258_v36  ;;  %1288 = vmatpush.bf16.msra.mxu2 %v1258_v36  ;;  %v761_v44 = vld [vmem:[#allocation2 + $0x30] sm:$0xff]  ;;  %v762_v45 = vld [vmem:[#allocation2] sm:$0xff]  ;;  %v766_v1 = vld [vmem:[#allocation2 + $0x68] sm:$0xff] }
 0x199   : > { %1289 = vmatpush.bf16.msra.mxu3 %v1258_v36  ;;  %1287 = vmatpush.bf16.msra.mxu1 %v1258_v36  ;;  %v773_v52 = vld [vmem:[#allocation2 + $0x60] sm:$0xff]  ;;  %v774_v53 = vld [vmem:[#allocation2 + $0x70] sm:$0xff]  ;;  %v776_v8 = vld [vmem:[#allocation2 + $0x28] sm:$0xff] }
 0x19a   : > { %860 = vperm.xlu1 %1372, %v790_v22   ;;  %v769_v55 = vld [vmem:[#allocation2 + $0x40] sm:$0xff]  ;;  %v765_v2 = vld [vmem:[#allocation2 + $0x50] sm:$0xff]  ;;  %v775_v9 = vld [vmem:[#allocation2 + $0x78] sm:$0xff] }
 0x19b   : > { %840 = vperm.xlu0 %1371, %v786_v23   ;;  %800 = vperm.xlu2 %1373, %v778_v24   ;;  %v770_v56 = vld [vmem:[#allocation2 + $0x20] sm:$0xff]  ;;  %v771_v10 = vld [vmem:[#allocation2 + $0x10] sm:$0xff]  ;;  %v772_v11 = vld [vmem:[#allocation2 + $0x38] sm:$0xff] }
 0x19c   : > { %967 = vmatpush.bf16.msra.mxu0 %v1257_v37  ;;  %1291 = vmatpush.bf16.msra.mxu2 %v1257_v37  ;;  %v764_v21 = vld [vmem:[#allocation2 + $0x18] sm:$0xff] }
 0x19d   : > { %1292 = vmatpush.bf16.msra.mxu3 %v1257_v37  ;;  %1290 = vmatpush.bf16.msra.mxu1 %v1257_v37  ;;  %v763_v22 = vld [vmem:[#allocation2 + $0x58] sm:$0xff] }
 0x1a0   : > { %968 = vmatpush.bf16.msra.mxu0 %v1256_v38  ;;  %1294 = vmatpush.bf16.msra.mxu2 %v1256_v38 }
 0x1a1   : > { %1295 = vmatpush.bf16.msra.mxu3 %v1256_v38  ;;  %1293 = vmatpush.bf16.msra.mxu1 %v1256_v38 }
 0x1a2   : > { %820 = vperm.xlu1 %1372, %v782_v26  }
 0x1a3   : > { %815 = vperm.xlu0 %1371, %v781_v27   ;;  %845 = vperm.xlu2 %1373, %v787_v28  }
 0x1a4   : > { %969 = vmatpush.bf16.msra.mxu0 %v1255_v39  ;;  %1297 = vmatpush.bf16.msra.mxu2 %v1255_v39 }
 0x1a5   : > { %1298 = vmatpush.bf16.msra.mxu3 %v1255_v39  ;;  %1296 = vmatpush.bf16.msra.mxu1 %v1255_v39 }
 0x1a8   : > { %970 = vmatpush.bf16.msra.mxu0 %v1254_v40  ;;  %1300 = vmatpush.bf16.msra.mxu2 %v1254_v40 }
 0x1a9   : > { %1301 = vmatpush.bf16.msra.mxu3 %v1254_v40  ;;  %1299 = vmatpush.bf16.msra.mxu1 %v1254_v40 }
 0x1aa   : > { %865 = vperm.xlu1 %1372, %v791_v29   ;;  %v767_v29 = vld [vmem:[#allocation2 + $0x8] sm:$0xff] }
 0x1ab   : > { %850 = vperm.xlu0 %1371, %v788_v30   ;;  %870 = vperm.xlu2 %1373, %v792_v31   ;;  %v768_v30 = vld [vmem:[#allocation2 + $0x48] sm:$0xff] }
 0x1ac   : > { %971 = vmatpush.bf16.msra.mxu0 %v1253_v41  ;;  %1303 = vmatpush.bf16.msra.mxu2 %v1253_v41 }
 0x1ad   : > { %1304 = vmatpush.bf16.msra.mxu3 %v1253_v41  ;;  %1302 = vmatpush.bf16.msra.mxu1 %v1253_v41 }
 0x1b0   : > { %972 = vmatpush.bf16.msra.mxu0 %v1252_v42  ;;  %1306 = vmatpush.bf16.msra.mxu2 %v1252_v42 }
 0x1b1   : > { %1307 = vmatpush.bf16.msra.mxu3 %v1252_v42  ;;  %1305 = vmatpush.bf16.msra.mxu1 %v1252_v42 }
 0x1b2   : > { %810 = vperm.xlu1 %1372, %v780_v32  }
 0x1b3   : > { %805 = vperm.xlu0 %1371, %v779_v33   ;;  %825 = vperm.xlu2 %1373, %v783_v34  }
 0x1bb   : > { %830 = vperm.xlu0 %1371, %v784_v35   ;;  %v1374_v35 = vld [vmem:[%s1701_s5] ss:$0 sm:$0xff] }
 0x1ed   : > { %v796_v43 = vpop.permute.xlu2 %795 }
 0x1ee   : > { %v873_v46 = vmul.f32 %v796_v43, %v761_v44 }
 0x1f5   : > { %v801_v47 = vpop.permute.xlu2 %800 }
 0x1f6   : > { %v874_v48 = vmul.f32 %v801_v47, %v762_v45 }
 0x1f8   : > { %v889_v49 = vpack.c.bf16 %v874_v48, %v873_v46 }
 0x1fa   : > { %973 = vmatmul.bf16.vlgmr.msra.gmra.mxu0 %v889_v49 }
 0x1fd   : > { %v846_v0 = vpop.permute.xlu2 %845 }
 0x1fe   : > { %v883_v17 = vmul.f32 %v846_v0, %v771_v10 }
 0x204   : > { %v856_v50 = vpop.permute.xlu1 %855 }
 0x205   : > { %v836_v51 = vpop.permute.xlu0 %835  ;;  %v885_v54 = vmul.f32 %v856_v50, %v773_v52  ;;  %v871_v12 = vpop.permute.xlu2 %870 }
 0x206   : > { %v881_v60 = vmul.f32 %v836_v51, %v769_v55  ;;  %v888_v14 = vmul.f32 %v871_v12, %v776_v8 }
 0x20c   : > { %v861_v57 = vpop.permute.xlu1 %860 }
 0x20d   : > { %v886_v58 = vmul.f32 %v861_v57, %v774_v53  ;;  %v841_v59 = vpop.permute.xlu0 %840  ;;  %v826_v28 = vpop.permute.xlu2 %825 }
 0x20e   : > { %v882_v61 = vmul.f32 %v841_v59, %v770_v56  ;;  %v879_v32 = vmul.f32 %v826_v28, %v767_v29 }
 0x20f   : > { %v895_v62 = vpack.c.bf16 %v886_v58, %v885_v54 }
 0x210   : > { %v893_v63 = vpack.c.bf16 %v882_v61, %v881_v60 }
 0x211   : > { %1003 = vmatmul.bf16.vlgmr.msra.gmra.mxu3 %v895_v62 }
 0x212   : > { %993 = vmatmul.bf16.vlgmr.msra.gmra.mxu2 %v893_v63 }
 0x214   : > { %v821_v3 = vpop.permute.xlu1 %820 }
 0x215   : > { %v878_v4 = vmul.f32 %v821_v3, %v766_v1  ;;  %v816_v5 = vpop.permute.xlu0 %815 }
 0x216   : > { %v877_v6 = vmul.f32 %v816_v5, %v765_v2 }
 0x218   : > { %v891_v7 = vpack.c.bf16 %v878_v4, %v877_v6 }
 0x21a   : > { %983 = vmatmul.bf16.vlgmr.msra.gmra.mxu1 %v891_v7 }
 0x21c   : > { %v866_v13 = vpop.permute.xlu1 %865 }
 0x21d   : > { %v887_v15 = vmul.f32 %v866_v13, %v775_v9  ;;  %v851_v16 = vpop.permute.xlu0 %850 }
 0x21e   : > { %v884_v18 = vmul.f32 %v851_v16, %v772_v11 }
 0x21f   : > { %v896_v19 = vpack.c.bf16 %v888_v14, %v887_v15 }
 0x220   : > { %v894_v20 = vpack.c.bf16 %v884_v18, %v883_v17 }
 0x221   : > { %1008 = vmatmul.bf16.gmra.mxu3 %v896_v19 }
 0x222   : > { %998 = vmatmul.bf16.gmra.mxu2 %v894_v20 }
 0x224   : > { %v811_v23 = vpop.permute.xlu1 %810 }
 0x225   : > { %v876_v24 = vmul.f32 %v811_v23, %v764_v21  ;;  %v806_v25 = vpop.permute.xlu0 %805 }
 0x226   : > { %v875_v26 = vmul.f32 %v806_v25, %v763_v22 }
 0x228   : > { %v890_v27 = vpack.c.bf16 %v876_v24, %v875_v26 }
 0x22a   : > { %978 = vmatmul.bf16.gmra.mxu0 %v890_v27 }
 0x22d   : > { %v831_v31 = vpop.permute.xlu0 %830 }
 0x22e   : > { %v880_v33 = vmul.f32 %v831_v31, %v768_v30 }
 0x230   : > { %v892_v34 = vpack.c.bf16 %v880_v33, %v879_v32 }
 0x232   : > { %988 = vmatmul.bf16.gmra.mxu1 %v892_v34 }
 0x277   : > { %v974_v36 = vpop.f32.mrf.mxu0 }
 0x278   : > { %v975_v37 = vadd.f32 %v1374_v35, %v974_v36 }
 0x27a   : > { %v1014_v38 = vmax.f32 %v975_v37, 0.0 }
 0x27c   : > { %1030 = vst [vmem:[%s1570_s30] sm:$0xff] %v1014_v38 }
 0x27f   : > { %v976_v39 = vpop.f32.mrf.mxu0 }
 0x280   : > { %v977_v40 = vadd.f32 %v1374_v35, %v976_v39 }
 0x282   : > { %v1015_v41 = vmax.f32 %v977_v40, 0.0 }
 0x284   : > { %1031 = vst [vmem:[%s1570_s30 + $0x8] sm:$0xff] %v1015_v41 }
 0x294   : > { %v1004_v42 = vpop.f32.mrf.mxu3 }
 0x295   : > { %v994_v43 = vpop.f32.mrf.mxu2  ;;  %v1005_v44 = vadd.f32 %v1374_v35, %v1004_v42 }
 0x296   : > { %v995_v45 = vadd.f32 %v1374_v35, %v994_v43 }
 0x297   : > { %v1026_v46 = vmax.f32 %v1005_v44, 0.0  ;;  %v984_v47 = vpop.f32.mrf.mxu1 }
 0x298   : > { %v1022_v48 = vmax.f32 %v995_v45, 0.0  ;;  %v985_v49 = vadd.f32 %v1374_v35, %v984_v47 }
 0x299   : > { %1042 = vst [vmem:[%s1570_s30 + $0x60] sm:$0xff] %v1026_v46 }
 0x29a   : > { %1038 = vst [vmem:[%s1570_s30 + $0x40] sm:$0xff] %v1022_v48  ;;  %v1018_v50 = vmax.f32 %v985_v49, 0.0 }
 0x29c   : > { %1034 = vst [vmem:[%s1570_s30 + $0x20] sm:$0xff] %v1018_v50  ;;  %v1006_v51 = vpop.f32.mrf.mxu3 }
 0x29d   : > { %v996_v52 = vpop.f32.mrf.mxu2  ;;  %v1007_v53 = vadd.f32 %v1374_v35, %v1006_v51 }
 0x29e   : > { %v997_v54 = vadd.f32 %v1374_v35, %v996_v52 }
 0x29f   : > { %v1027_v55 = vmax.f32 %v1007_v53, 0.0  ;;  %v986_v56 = vpop.f32.mrf.mxu1 }
 0x2a0   : > { %v1023_v57 = vmax.f32 %v997_v54, 0.0  ;;  %v987_v58 = vadd.f32 %v1374_v35, %v986_v56 }
 0x2a1   : > { %1043 = vst [vmem:[%s1570_s30 + $0x68] sm:$0xff] %v1027_v55 }
 0x2a2   : > { %1039 = vst [vmem:[%s1570_s30 + $0x48] sm:$0xff] %v1023_v57  ;;  %v1019_v59 = vmax.f32 %v987_v58, 0.0 }
 0x2a4   : > { %1035 = vst [vmem:[%s1570_s30 + $0x28] sm:$0xff] %v1019_v59  ;;  %v1009_v60 = vpop.f32.mrf.mxu3 }
 0x2a5   : > { %v999_v61 = vpop.f32.mrf.mxu2  ;;  %v1010_v62 = vadd.f32 %v1374_v35, %v1009_v60 }
 0x2a6   : > { %v1000_v63 = vadd.f32 %v1374_v35, %v999_v61 }
 0x2a7   : > { %v1028_v0 = vmax.f32 %v1010_v62, 0.0  ;;  %v979_v1 = vpop.f32.mrf.mxu0 }
 0x2a8   : > { %v1024_v2 = vmax.f32 %v1000_v63, 0.0  ;;  %v980_v3 = vadd.f32 %v1374_v35, %v979_v1 }
 0x2a9   : > { %1044 = vst [vmem:[%s1570_s30 + $0x70] sm:$0xff] %v1028_v0 }
 0x2aa   : > { %1040 = vst [vmem:[%s1570_s30 + $0x50] sm:$0xff] %v1024_v2  ;;  %v1016_v4 = vmax.f32 %v980_v3, 0.0 }
 0x2ac   : > { %1032 = vst [vmem:[%s1570_s30 + $0x10] sm:$0xff] %v1016_v4  ;;  %v1011_v5 = vpop.f32.mrf.mxu3 }
 0x2ad   : > { %v1001_v6 = vpop.f32.mrf.mxu2  ;;  %v1012_v7 = vadd.f32 %v1374_v35, %v1011_v5 }
 0x2ae   : > { %v1002_v8 = vadd.f32 %v1374_v35, %v1001_v6 }
 0x2af   : > { %v1029_v9 = vmax.f32 %v1012_v7, 0.0  ;;  %v981_v10 = vpop.f32.mrf.mxu0  ;;  %v989_v11 = vpop.f32.mrf.mxu1 }
 0x2b0   : > { %v1025_v12 = vmax.f32 %v1002_v8, 0.0  ;;  %v982_v13 = vadd.f32 %v1374_v35, %v981_v10  ;;  %v990_v14 = vadd.f32 %v1374_v35, %v989_v11 }
 0x2b1   : > { %1045 = vst [vmem:[%s1570_s30 + $0x78] sm:$0xff] %v1029_v9 }
 0x2b2   : > { %1041 = vst [vmem:[%s1570_s30 + $0x58] sm:$0xff] %v1025_v12  ;;  %v1017_v15 = vmax.f32 %v982_v13, 0.0  ;;  %v1020_v16 = vmax.f32 %v990_v14, 0.0 }
 0x2b4   : > { %1033 = vst [vmem:[%s1570_s30 + $0x18] sm:$0xff] %v1017_v15 }
 0x2b5   : > { %1036 = vst [vmem:[%s1570_s30 + $0x30] sm:$0xff] %v1020_v16 }
 0x2b7   : > { %v991_v17 = vpop.f32.mrf.mxu1 }
 0x2b8   : > { %v992_v18 = vadd.f32 %v1374_v35, %v991_v17 }
 0x2ba   : > { %v1021_v19 = vmax.f32 %v992_v18, 0.0 }
 0x2bc   : > { %1037 = vst [vmem:[%s1570_s30 + $0x38] sm:$0xff] %v1021_v19 }
 0x2bd PF: > { %s16_s27 = sadd.s32 1, %s1429_s27   ;;  %s1703_s21 = smov %s1409_s22 }
 0x2be   : > { %p13_p0 = scmp.ge.s32.totalorder %s16_s27, 11   ;;  %s1704_s22 = smov %s1520_s10 }
 0x2bf   : > { %s1705_s23 = smov %s1421_s25  ;;  %s1706_s24 = smov %s1425_s26 }
 0x2c0   : > { %s1707_s25 = smov %s1710_s28  ;;  %s1708_s26 = smov %s1714_s29 }
 0x2c1   :  { %15 = sbr.rel (!%p13_p0) target bundleno = 4 (0x4), region = 137 }

</bundles_post_ra>
